<compile_context>
chip_gen: v7x
topology: tpu7x:2x2x1
jax: 0.10.0
libtpu: 0.0.40
codegen_flags: <defaults>
</compile_context>

<pallas_src>
import math

import jax
import jax.numpy as jnp
from jax.experimental import pallas as pl
from jax.experimental.pallas import tpu as pltpu

LEAKY_SLOPE = 0.01   # nn.LeakyReLU() default
BN_EPS = 1e-5        # nn.BatchNorm2d default eps


def _round_up(a, b):
    return ((a + b - 1) // b) * b


def _bn_stats_kernel(x_ref, c_ref, wimg_ref, wcond_ref, s_ref, ss_ref):
    """Pass 1: accumulate per-flat-column sum / sum-of-squares of h over the batch."""
    @pl.when(pl.program_id(0) == 0)
    def _init():
        s_ref[...] = jnp.zeros_like(s_ref)
        ss_ref[...] = jnp.zeros_like(ss_ref)

    # Factored 1x1 conv (image part + condition part), f32 accumulation on the MXU.
    h = (jnp.dot(x_ref[...], wimg_ref[...], preferred_element_type=jnp.float32)
         + jnp.dot(c_ref[...], wcond_ref[...], preferred_element_type=jnp.float32))
    s_ref[...] += jnp.sum(h, axis=0, keepdims=True)        # [1, F] sublane reduce
    ss_ref[...] += jnp.sum(h * h, axis=0, keepdims=True)   # [1, F]


def _apply_kernel(x_ref, c_ref, wimg_ref, wcond_ref, aff_ref, b2_ref, out_ref):
    """Pass 2: recompute h, apply folded BN affine + LeakyReLU + 4x4-conv reduce."""
    h = (jnp.dot(x_ref[...], wimg_ref[...], preferred_element_type=jnp.float32)
         + jnp.dot(c_ref[...], wcond_ref[...], preferred_element_type=jnp.float32))
    scale = aff_ref[0:1, :]        # [1, F]: gamma * rsqrt(var + eps), tiled over pixels
    shift = aff_ref[1:2, :]        # [1, F]: beta - mean * scale
    w2f = aff_ref[2:3, :]          # [1, F]: conv2 weight, pixel-major channel-flattened
    hn = h * scale + shift
    act = jnp.where(hn >= 0, hn, LEAKY_SLOPE * hn)
    # Conv2d(C, 1, 4) on the 4x4 map == full dot of each act row with w2: lane reduce,
    # stored lane-dense as a (1, blk) row (sample index on the lane axis).
    out_ref[...] = jnp.sum(act * w2f, axis=1)[None, :] + b2_ref[0, 0]


def _vmem_limit_bytes(blk, k_img, d_cond, f_flat, in_itemsize):
    """True-bytes VMEM estimate incl. lane padding, double buffers and f32 temps."""
    d_pad = _round_up(max(d_cond, 1), 128)
    resident = 2 * (k_img + d_cond + 8) * f_flat * in_itemsize + 2 * 8 * f_flat * 4
    blocks = 2 * blk * (k_img + d_pad) * in_itemsize            # double-buffered x/c tiles
    outs = 2 * 8 * max(blk, f_flat) * 4                          # output / stats tiles
    interm = 4 * blk * f_flat * 4                                # h / act f32 headroom
    return resident + blocks + outs + interm + (2 << 20)


def cond_discriminator_forward(x, c, params, *, compute_dtype=jnp.bfloat16, block_n=512):
    """x: [N, 8*in_chans, 4, 4] (NCHW), c: [N, condition_dim] -> [N, 1, 1, 1] (f32)."""
    assert c.ndim == 2, 'Condition vector shape mismatched'
    N, C8, H, W = x.shape
    assert (H, W) == (4, 4)
    D = c.shape[-1]
    Cout = params['w1'].shape[0]
    P = H * W                       # 16 pixels of the 4x4 map
    K = C8 * P                      # flattened image-input axis (NCHW order)
    F = P * Cout                    # flattened pixel-major out-channel axis (lane axis)
    assert block_n % 128 == 0
    in_itemsize = jnp.dtype(compute_dtype).itemsize

    # Batch block: multiple of 128 so multi-block lane-dense output stores stay aligned;
    # shrink if the per-step footprint would exceed a v7x-safe VMEM budget.
    blk = min(block_n, _round_up(N, 128))
    while blk > 128 and _vmem_limit_bytes(blk, K, D, F, in_itemsize) > (44 << 20):
        blk = max(128, _round_up(blk // 2, 128))
    n_pad = _round_up(N, blk)
    n_blocks = n_pad // blk
    vmem_limit = int(min(max(_vmem_limit_bytes(blk, K, D, F, in_itemsize), 16 << 20),
                         48 << 20))

    # x keeps NCHW memory order (reshape is metadata-only).  Zero-padded batch rows
    # contribute exactly 0 to the BN sums (no conv bias is added in-kernel), so padding
    # to a block multiple does not perturb the batch statistics; padded outputs are
    # sliced off below.  In a real pipeline x/c would already be bf16 upstream.
    x2d = jnp.pad(x.reshape(N, K).astype(compute_dtype), ((0, n_pad - N), (0, 0)))
    c2d = jnp.pad(c.astype(compute_dtype), ((0, n_pad - N), (0, 0)))

    # Split the 1x1 conv weight into image / condition halves and expand the image half
    # into a block-structured [K, F] matrix so the matmul directly produces h in
    # pixel-major channel-flattened (lane-dense) form.  The 16x structural zeros are
    # cheap at this head's sizes; for very large channel counts one would switch to an
    # NHWC-tiled layout instead.
    w1 = params['w1'].reshape(Cout, C8 + D).astype(jnp.float32)
    w1x = w1[:, :C8].T                                    # [C8, Cout]
    w1c = w1[:, C8:].T                                    # [D, Cout]
    eye_p = jnp.eye(P, dtype=jnp.float32)
    w_img = (w1x[:, None, None, :] * eye_p[None, :, :, None]).reshape(K, F)
    w_img = w_img.astype(compute_dtype)                   # [K, F]
    w_cond = jnp.tile(w1c, (1, P)).astype(compute_dtype)  # [D, F]
    # conv1 bias intentionally omitted: it cancels exactly under training-mode BatchNorm.

    x_spec = pl.BlockSpec((blk, K), lambda i: (i, 0))
    c_spec = pl.BlockSpec((blk, D), lambda i: (i, 0))
    wimg_spec = pl.BlockSpec((K, F), lambda i: (0, 0))    # constant map: fetched once
    wcond_spec = pl.BlockSpec((D, F), lambda i: (0, 0))

    # ---- pass 1: batch statistics (grid axis is a reduction -> "arbitrary") ----
    s, ss = pl.pallas_call(
        _bn_stats_kernel,
        grid=(n_blocks,),
        in_specs=[x_spec, c_spec, wimg_spec, wcond_spec],
        out_specs=[pl.BlockSpec((1, F), lambda i: (0, 0)),
                   pl.BlockSpec((1, F), lambda i: (0, 0))],
        out_shape=[jax.ShapeDtypeStruct((1, F), jnp.float32),
                   jax.ShapeDtypeStruct((1, F), jnp.float32)],
        compiler_params=pltpu.CompilerParams(
            dimension_semantics=("arbitrary",), vmem_limit_bytes=vmem_limit),
    )(x2d, c2d, w_img, w_cond)

    # ---- tiny per-channel BN math between the passes (pure JAX, negligible) ----
    count = jnp.float32(N * P)                            # real (unpadded) samples only
    mean_c = s.reshape(P, Cout).sum(axis=0) / count
    ex2_c = ss.reshape(P, Cout).sum(axis=0) / count
    var_c = jnp.maximum(ex2_c - mean_c * mean_c, 0.0)
    scale_c = params['gamma'].astype(jnp.float32) / jnp.sqrt(var_c + BN_EPS)
    shift_c = params['beta'].astype(jnp.float32) - mean_c * scale_c
    w2_flat = jnp.transpose(params['w2'][0], (1, 2, 0)).reshape(F).astype(jnp.float32)
    aff = jnp.stack([jnp.tile(scale_c, P), jnp.tile(shift_c, P), w2_flat], axis=0)  # [3, F]
    b2 = params['b2'].reshape(1, 1).astype(jnp.float32)

    # ---- pass 2: normalize / activate / reduce (independent blocks -> "parallel") ----
    out = pl.pallas_call(
        _apply_kernel,
        grid=(n_blocks,),
        in_specs=[x_spec, c_spec, wimg_spec, wcond_spec,
                  pl.BlockSpec((3, F), lambda i: (0, 0)),
                  pl.BlockSpec((1, 1), lambda i: (0, 0),
                               memory_space=pltpu.MemorySpace.SMEM)],
        out_specs=pl.BlockSpec((1, blk), lambda i: (0, i)),
        out_shape=jax.ShapeDtypeStruct((1, n_pad), jnp.float32),
        compiler_params=pltpu.CompilerParams(
            dimension_semantics=("parallel",), vmem_limit_bytes=vmem_limit),
    )(x2d, c2d, w_img, w_cond, aff, b2)

    return out[0, :N].reshape(N, 1, 1, 1)


def init_params(key, in_chans, condition_dim, out_chans):
    """Deterministic init mirroring nn.Conv2d / nn.BatchNorm2d default shapes."""
    cin = 8 * in_chans + condition_dim
    k1, k2, k3, k4 = jax.random.split(key, 4)
    bound1 = 1.0 / math.sqrt(cin * 1 * 1)
    bound2 = 1.0 / math.sqrt(out_chans * 4 * 4)
    return dict(
        w1=jax.random.uniform(k1, (out_chans, cin, 1, 1), jnp.float32, -bound1, bound1),
        b1=jax.random.uniform(k2, (out_chans,), jnp.float32, -bound1, bound1),
        gamma=jnp.ones((out_chans,), jnp.float32),   # BatchNorm2d default weight
        beta=jnp.zeros((out_chans,), jnp.float32),   # BatchNorm2d default bias
        w2=jax.random.uniform(k3, (1, out_chans, 4, 4), jnp.float32, -bound2, bound2),
        b2=jax.random.uniform(k4, (1,), jnp.float32, -bound2, bound2),
    )


def reference_forward(x, c, params):
    """Pure-JAX reference (lax convs, b1 included) of the PyTorch forward."""
    N = x.shape[0]
    c4 = jnp.broadcast_to(c[:, :, None, None], (N, c.shape[1], 4, 4))
    xc = jnp.concatenate([x, c4], axis=1)
    h = jax.lax.conv_general_dilated(xc, params['w1'], (1, 1), 'VALID',
                                     dimension_numbers=('NCHW', 'OIHW', 'NCHW'))
    h = h + params['b1'][None, :, None, None]
    mean = jnp.mean(h, axis=(0, 2, 3), keepdims=True)
    var = jnp.mean((h - mean) ** 2, axis=(0, 2, 3), keepdims=True)
    hn = (h - mean) / jnp.sqrt(var + BN_EPS)
    hn = hn * params['gamma'][None, :, None, None] + params['beta'][None, :, None, None]
    act = jnp.where(hn >= 0, hn, LEAKY_SLOPE * hn)
    out = jax.lax.conv_general_dilated(act, params['w2'], (1, 1), 'VALID',
                                       dimension_numbers=('NCHW', 'OIHW', 'NCHW'))
    return out + params['b2'][None, :, None, None]


if __name__ == "__main__":
    in_chans = 4          # -> x has 8*in_chans = 32 channels
    condition_dim = 32
    out_chans = 32
    N = 2

    key = jax.random.PRNGKey(0)
    kx, kc, kp = jax.random.split(key, 3)
    x = jax.random.normal(kx, (N, 8 * in_chans, 4, 4), jnp.float32)
    c = jax.random.normal(kc, (N, condition_dim), jnp.float32)
    params = init_params(kp, in_chans, condition_dim, out_chans)

    # f32 path: tight check against the pure-JAX reference.
    out_f32 = jax.block_until_ready(
        cond_discriminator_forward(x, c, params, compute_dtype=jnp.float32))
    ref = reference_forward(x, c, params)
    assert out_f32.shape == (N, 1, 1, 1)
    assert jnp.allclose(out_f32, ref, atol=5e-4, rtol=5e-4), (out_f32, ref)

    # bf16 path (default, HBM-resident bf16): compare against the same reference fed
    # the identical bf16-rounded x / c / w1, so only kernel error (f32 accumulation
    # order, BN variance formula) remains.
    out_bf16 = jax.block_until_ready(cond_discriminator_forward(x, c, params))
    q = lambda a: a.astype(jnp.bfloat16).astype(jnp.float32)
    ref_bf = reference_forward(q(x), q(c), {**params, 'w1': q(params['w1'])})
    assert out_bf16.shape == (N, 1, 1, 1)
    assert jnp.allclose(out_bf16, ref_bf, atol=2e-3, rtol=2e-3), (out_bf16, ref_bf)

    print("KERNEL_OK")
</pallas_src>

<mosaic_0001>
module attributes {stable_mosaic.version = 11 : i64} {
  func.func @_bn_stats_kernel(%arg0: i32, %arg1: memref<128x512xf32, #tpu.memory_space<vmem>>, %arg2: memref<128x32xf32, #tpu.memory_space<vmem>>, %arg3: memref<512x512xf32, #tpu.memory_space<vmem>>, %arg4: memref<32x512xf32, #tpu.memory_space<vmem>>, %arg5: memref<1x512xf32, #tpu.memory_space<vmem>>, %arg6: memref<1x512xf32, #tpu.memory_space<vmem>>) attributes {dimension_semantics = [#tpu.dimension_semantics<arbitrary>], iteration_bounds = array<i64: 1>, scalar_prefetch = 0 : i64, scratch_operands = 0 : i64, tpu.core_type = #tpu.core_type<tc>, window_params = [{transform_indices = @transform_0, window_bounds = array<i64: 128, 512>}, {transform_indices = @transform_1, window_bounds = array<i64: 128, 32>}, {pipeline_mode = #tpu.pipeline_mode<synchronous>, transform_indices = @transform_2, window_bounds = array<i64: 512, 512>}, {pipeline_mode = #tpu.pipeline_mode<synchronous>, transform_indices = @transform_3, window_bounds = array<i64: 32, 512>}, {pipeline_mode = #tpu.pipeline_mode<synchronous>, transform_indices = @transform_4, window_bounds = array<i64: 1, 512>}, {pipeline_mode = #tpu.pipeline_mode<synchronous>, transform_indices = @transform_5, window_bounds = array<i64: 1, 512>}]} {
    %c0_i32 = arith.constant 0 : i32
    %0 = arith.cmpi eq, %arg0, %c0_i32 : i32
    %1 = arith.extui %0 : i1 to i32
    %c0_i32_0 = arith.constant 0 : i32
    %2 = arith.cmpi ne, %1, %c0_i32_0 : i32
    scf.if %2 {
      %cst_19 = arith.constant 0.000000e+00 : f32
      %21 = vector.broadcast %cst_19 : f32 to vector<1x512xf32>
      %c0_20 = arith.constant 0 : index
      %c0_21 = arith.constant 0 : index
      %22 = vector.load %arg5[%c0_20, %c0_21] : memref<1x512xf32, #tpu.memory_space<vmem>>, vector<1x512xf32>
      tpu.vector_store %arg5[%c0_20, %c0_21], %21 {strides = array<i32>} : memref<1x512xf32, #tpu.memory_space<vmem>>, vector<1x512xf32>,
      %cst_22 = arith.constant 0.000000e+00 : f32
      %23 = vector.broadcast %cst_22 : f32 to vector<1x512xf32>
      %c0_23 = arith.constant 0 : index
      %c0_24 = arith.constant 0 : index
      %24 = vector.load %arg6[%c0_23, %c0_24] : memref<1x512xf32, #tpu.memory_space<vmem>>, vector<1x512xf32>
      tpu.vector_store %arg6[%c0_23, %c0_24], %23 {strides = array<i32>} : memref<1x512xf32, #tpu.memory_space<vmem>>, vector<1x512xf32>,
    } else {
    }
    %c0 = arith.constant 0 : index
    %c0_1 = arith.constant 0 : index
    %3 = vector.load %arg1[%c0, %c0_1] : memref<128x512xf32, #tpu.memory_space<vmem>>, vector<128x512xf32>
    %c0_2 = arith.constant 0 : index
    %c0_3 = arith.constant 0 : index
    %4 = vector.load %arg3[%c0_2, %c0_3] : memref<512x512xf32, #tpu.memory_space<vmem>>, vector<512x512xf32>
    %cst = arith.constant dense<0.000000e+00> : vector<128x512xf32>
    %5 = tpu.matmul %3, %4, %cst {dimension_numbers = #tpu.dot_dimension_numbers<[1], [0], [0], [1], [0, 0, 1, 1], [], []>} : vector<128x512xf32>, vector<512x512xf32>, vector<128x512xf32> -> vector<128x512xf32>
    %c0_4 = arith.constant 0 : index
    %c0_5 = arith.constant 0 : index
    %6 = vector.load %arg2[%c0_4, %c0_5] : memref<128x32xf32, #tpu.memory_space<vmem>>, vector<128x32xf32>
    %c0_6 = arith.constant 0 : index
    %c0_7 = arith.constant 0 : index
    %7 = vector.load %arg4[%c0_6, %c0_7] : memref<32x512xf32, #tpu.memory_space<vmem>>, vector<32x512xf32>
    %cst_8 = arith.constant dense<0.000000e+00> : vector<128x512xf32>
    %8 = tpu.matmul %6, %7, %cst_8 {dimension_numbers = #tpu.dot_dimension_numbers<[1], [0], [0], [1], [0, 0, 1, 1], [], []>} : vector<128x32xf32>, vector<32x512xf32>, vector<128x512xf32> -> vector<128x512xf32>
    %9 = arith.addf %5, %8 : vector<128x512xf32>
    %c0_9 = arith.constant 0 : index
    %c0_10 = arith.constant 0 : index
    %10 = vector.load %arg5[%c0_9, %c0_10] : memref<1x512xf32, #tpu.memory_space<vmem>>, vector<1x512xf32>
    %cst_11 = arith.constant dense<0.000000e+00> : vector<512xf32>
    %11 = vector.multi_reduction <add>, %9, %cst_11 [0] : vector<128x512xf32> to vector<512xf32>
    %12 = vector.shape_cast %11 : vector<512xf32> to vector<1x512xf32>
    %13 = arith.addf %10, %12 : vector<1x512xf32>
    %c0_12 = arith.constant 0 : index
    %c0_13 = arith.constant 0 : index
    %14 = vector.load %arg5[%c0_12, %c0_13] : memref<1x512xf32, #tpu.memory_space<vmem>>, vector<1x512xf32>
    tpu.vector_store %arg5[%c0_12, %c0_13], %13 {strides = array<i32>} : memref<1x512xf32, #tpu.memory_space<vmem>>, vector<1x512xf32>,
    %c0_14 = arith.constant 0 : index
    %c0_15 = arith.constant 0 : index
    %15 = vector.load %arg6[%c0_14, %c0_15] : memref<1x512xf32, #tpu.memory_space<vmem>>, vector<1x512xf32>
    %16 = arith.mulf %9, %9 : vector<128x512xf32>
    %cst_16 = arith.constant dense<0.000000e+00> : vector<512xf32>
    %17 = vector.multi_reduction <add>, %16, %cst_16 [0] : vector<128x512xf32> to vector<512xf32>
    %18 = vector.shape_cast %17 : vector<512xf32> to vector<1x512xf32>
    %19 = arith.addf %15, %18 : vector<1x512xf32>
    %c0_17 = arith.constant 0 : index
    %c0_18 = arith.constant 0 : index
    %20 = vector.load %arg6[%c0_17, %c0_18] : memref<1x512xf32, #tpu.memory_space<vmem>>, vector<1x512xf32>
    tpu.vector_store %arg6[%c0_17, %c0_18], %19 {strides = array<i32>} : memref<1x512xf32, #tpu.memory_space<vmem>>, vector<1x512xf32>,
    return
  }
  func.func @transform_0(%arg0: i32) -> (i32, i32) {
    %c0_i32 = arith.constant 0 : i32
    %c0_i32_0 = arith.constant 0 : i32
    return %arg0, %c0_i32 : i32, i32
  }
  func.func @transform_1(%arg0: i32) -> (i32, i32) {
    %c0_i32 = arith.constant 0 : i32
    %c0_i32_0 = arith.constant 0 : i32
    return %arg0, %c0_i32 : i32, i32
  }
  func.func @transform_2(%arg0: i32) -> (i32, i32) {
    %c0_i32 = arith.constant 0 : i32
    %c0_i32_0 = arith.constant 0 : i32
    %c0_i32_1 = arith.constant 0 : i32
    return %c0_i32, %c0_i32_0 : i32, i32
  }
  func.func @transform_3(%arg0: i32) -> (i32, i32) {
    %c0_i32 = arith.constant 0 : i32
    %c0_i32_0 = arith.constant 0 : i32
    %c0_i32_1 = arith.constant 0 : i32
    return %c0_i32, %c0_i32_0 : i32, i32
  }
  func.func @transform_4(%arg0: i32) -> (i32, i32) {
    %c0_i32 = arith.constant 0 : i32
    %c0_i32_0 = arith.constant 0 : i32
    %c0_i32_1 = arith.constant 0 : i32
    return %c0_i32, %c0_i32_0 : i32, i32
  }
  func.func @transform_5(%arg0: i32) -> (i32, i32) {
    %c0_i32 = arith.constant 0 : i32
    %c0_i32_0 = arith.constant 0 : i32
    %c0_i32_1 = arith.constant 0 : i32
    return %c0_i32, %c0_i32_0 : i32, i32
  }
}

</mosaic_0001>

<bundles_post_ra>
// kernel: tpu_custom_call.1
= control target key start
LH: loop header
LB: loop body
LE: loop exit
PB: predicated region body
PF: predicated region fallthrough
CT: control target
= control target key end

     0   :  { %11 = vsyncpa [#allocation3], 0  ;;  %s2562_s0 = inlined_call_operand.hbm [shape: f32[128,512], index: 0, kind: input, shape index: {}]   ;;  %s2563_s1 = inlined_call_operand.vmem [shape: f32[128,32], index: 1, kind: input, shape index: {}]   ;;  %s2564_s2 = inlined_call_operand.hbm [shape: f32[512,512], index: 2, kind: input, shape index: {}]   ;;  %s2565_s3 = inlined_call_operand.vmem [shape: f32[32,512], index: 3, kind: input, shape index: {}]   ;;  %s2566_s4 = inlined_call_operand.hbm [shape: f32[1,512], index: 4, kind: output, shape index: {0}]   ;;  %s2567_s5 = inlined_call_operand.hbm [shape: f32[1,512], index: 5, kind: output, shape index: {1}]  }
   0x1   :  { %12 = vsyncpa [#allocation6], 0 }
   0x2   :  { %13 = vsyncpa [#allocation4], 0 }
   0x3   :  { %14 = vsyncpa [#allocation9], 0  ;;  %s2292_s18 = smov [#allocation2]   ;;  %s2196_s22 = scalar_lea.hbm %s2562_s0, 8192 }
   0x4   :  { %s20_s19 = sshll.u32 %s2292_s18, 4  ;;  %p2197_p0 = scmp.ne.s32.totalorder %s2562_s0, %s2196_s22  ;;  %s21_s19 = int_to_ptr.vmem [resolvable:$true] %s20_s19 }
   0x5   :  { %p2200_p1 = scmp.lt.u32.totalorder %s2196_s22, %s2562_s0 }
   0x7   :  { %p2202_p2 = pnand %p2200_p1, %p2197_p0 }
   0x9   :  { %2205 = shalt.err (!%p2202_p2)
}
   0xa   :  { %s2206_s27 = scalar_lea.vmem %s21_s19, 8192  ;;  %p2211_p4 = scmp.lt.s32.totalorder %s21_s19, %s21_s19 }
   0xb   :  { %p2207_p3 = scmp.ne.s32.totalorder %s21_s19, %s2206_s27  ;;  %p2212_p5 = scmp.lt.s32.totalorder %s2206_s27, %s2206_s27 }
   0xd   :  { %p2213_p6 = por %p2212_p5, %p2211_p4 }
   0xf   :  { %p2214_p7 = pnand %p2213_p6, %p2207_p3 }
  0x11   :  { %2217 = shalt.err (!%p2214_p7)
}
  0x12   :  { %s2293_s28 = smov 512   ;;  %s2294_s29 = smov 32  }
  0x13   :  { %26 = dma.hbm_to_vmem [thread:$0]  %s2562_s0, 8192, %s21_s19, [#allocation3], %s2293_s28, %s2293_s28, %s2294_s29  }
  0x14   :  { %s2295_s7 = smov [#allocation5]   ;;  %s2218_s11 = scalar_lea.hbm %s2564_s2, 32768 }
  0x15   :  { %s34_s8 = sshll.u32 %s2295_s7, 4  ;;  %p2219_p8 = scmp.ne.s32.totalorder %s2564_s2, %s2218_s11  ;;  %s35_s8 = int_to_ptr.vmem [resolvable:$true] %s34_s8 }
  0x16   :  { %p2222_p9 = scmp.lt.u32.totalorder %s2218_s11, %s2564_s2 }
  0x18   :  { %p2224_p10 = pnand %p2222_p9, %p2219_p8 }
  0x1a   :  { %2227 = shalt.err (!%p2224_p10)
}
  0x1b   :  { %s2228_s16 = scalar_lea.vmem %s35_s8, 32768  ;;  %p2233_p12 = scmp.lt.s32.totalorder %s35_s8, %s35_s8 }
  0x1c   :  { %p2229_p11 = scmp.ne.s32.totalorder %s35_s8, %s2228_s16  ;;  %p2234_p13 = scmp.lt.s32.totalorder %s2228_s16, %s2228_s16 }
  0x1e   :  { %p2235_p0 = por %p2234_p13, %p2233_p12 }
  0x20   :  { %p2236_p1 = pnand %p2235_p0, %p2229_p11 }
  0x22   :  { %2239 = shalt.err (!%p2236_p1)
}
  0x23   :  { %40 = dma.hbm_to_vmem [thread:$0]  %s2564_s2, 32768, %s35_s8, [#allocation6], %s2293_s28, %s2293_s28, %s2294_s29  }
  0x24   :  { %2284 = dma.done.wait [#allocation3], 8192  }
  0x25   :  { %2285 = vsyncadd [#allocation3], 4294959104 }
  0x26   :  { %2286 = dma.done.wait [#allocation6], 32768  }
  0x27   :  { %2287 = vsyncadd [#allocation6], 4294934528  ;;  %v2296_v0 = vmov 0.0   ;;  %v396_v1 = vld [vmem:[%s2565_s3 + $0x8] sm:$0xff]  ;;  %v398_v3 = vld [vmem:[%s2565_s3 + $0x18] sm:$0xff]  ;;  %vm411_vm0 = vcmask 261120  }
  0x28   :  { %524 = vmatprep.mubr.f32.mxu0 %v2296_v0  ;;  %685 = vmatprep.mubr.f32.mxu1 %v2296_v0  ;;  %v400_v2 = vld [vmem:[%s2565_s3 + $0x28] sm:$0xff]  ;;  %v402_v5 = vld [vmem:[%s2565_s3 + $0x38] sm:$0xff]  ;;  %v395_v6 = vld [vmem:[%s2565_s3] sm:$0xff]  ;;  %s2299_s26 = smov [#allocation8]  }
  0x29   :  { %v1788_v4 = vpack.c.bf16 %v400_v2, %v396_v1  ;;  %v399_v7 = vld [vmem:[%s2565_s3 + $0x20] sm:$0xff]  ;;  %v1796_v8 = vpack.c.bf16 %v402_v5, %v398_v3  ;;  %v397_v10 = vld [vmem:[%s2565_s3 + $0x10] sm:$0xff]  ;;  %v404_v12 = vld [vmem:[%s2565_s3 + $0x48] sm:$0xff]  ;;  %s1742_s27 = sshll.u32 %s2299_s26, 4  ;;  %s1743_s27 = int_to_ptr.vmem [resolvable:$true] %s1742_s27 }
  0x2a   :  { %v1790_v9 = vpack.c.bf16 %v399_v7, %v395_v6  ;;  %v401_v11 = vld [vmem:[%s2565_s3 + $0x30] sm:$0xff]  ;;  %v408_v14 = vld [vmem:[%s2565_s3 + $0x68] sm:$0xff]  ;;  %v406_v15 = vld [vmem:[%s2565_s3 + $0x58] sm:$0xff] }
  0x2b   :  { %1789 = vmatprep.subr.bf16.mxu0 %v1788_v4  ;;  %v1798_v13 = vpack.c.bf16 %v401_v11, %v397_v10  ;;  %v410_v16 = vld [vmem:[%s2565_s3 + $0x78] sm:$0xff]  ;;  %1797 = vmatprep.subr.bf16.mxu1 %v1796_v8  ;;  %v1792_v17 = vpack.c.bf16 %v408_v14, %v404_v12  ;;  %v403_v19 = vld [vmem:[%s2565_s3 + $0x40] sm:$0xff]  ;;  %v405_v21 = vld [vmem:[%s2565_s3 + $0x50] sm:$0xff] }
  0x2c   :  { %1791 = vmatpush1.bf16.msra.mxu0 %v1790_v9  ;;  %v1800_v18 = vpack.c.bf16 %v410_v16, %v406_v15  ;;  %v407_v20 = vld [vmem:[%s2565_s3 + $0x60] sm:$0xff]  ;;  %v409_v23 = vld [vmem:[%s2565_s3 + $0x70] sm:$0xff]  ;;  %v124_v24 = vld [vmem:[#allocation5 + $0x8] sm:$0xff] }
  0x2d   :  { %1799 = vmatpush1.bf16.msra.mxu1 %v1798_v13  ;;  %v1794_v22 = vpack.c.bf16 %v407_v20, %v403_v19  ;;  %1793 = vmatprep.subr.bf16.mxu0 %v1792_v17  ;;  %v1802_v25 = vpack.c.bf16 %v409_v23, %v405_v21  ;;  %v128_v26 = vld [vmem:[#allocation5 + $0x28] sm:$0xff]  ;;  %v126_v27 = vld [vmem:[#allocation5 + $0x18] sm:$0xff]  ;;  %v123_v31 = vld [vmem:[#allocation5] sm:$0xff] }
  0x2e   :  { %1801 = vmatprep.subr.bf16.mxu1 %v1800_v18  ;;  %v130_v28 = vld [vmem:[#allocation5 + $0x38] sm:$0xff]  ;;  %v1804_v29 = vpack.c.bf16 %v128_v26, %v124_v24  ;;  %v127_v32 = vld [vmem:[#allocation5 + $0x20] sm:$0xff]  ;;  %v125_v33 = vld [vmem:[#allocation5 + $0x10] sm:$0xff] }
  0x2f   :  { %v1932_v30 = vpack.c.bf16 %v130_v28, %v126_v27  ;;  %v379_v34 = vld [vmem:[%s2563_s1] sm:$0xff]  ;;  %v1806_v35 = vpack.c.bf16 %v127_v32, %v123_v31  ;;  %v129_v36 = vld [vmem:[#allocation5 + $0x30] sm:$0xff]  ;;  %v132_v37 = vld [vmem:[#allocation5 + $0x48] sm:$0xff] }
  0x30   :  { %1795 = vmatpush1.bf16.msra.mxu0 %v1794_v22  ;;  %v1934_v38 = vpack.c.bf16 %v129_v36, %v125_v33  ;;  %v136_v39 = vld [vmem:[#allocation5 + $0x68] sm:$0xff]  ;;  %v134_v40 = vld [vmem:[#allocation5 + $0x58] sm:$0xff]  ;;  %v131_v43 = vld [vmem:[#allocation5 + $0x40] sm:$0xff] }
  0x31   :  { %1803 = vmatpush1.bf16.msra.mxu1 %v1802_v25  ;;  %1805 = vmatprep.subr.bf16.mxu0 %v1804_v29  ;;  %v138_v41 = vld [vmem:[#allocation5 + $0x78] sm:$0xff]  ;;  %v1808_v42 = vpack.c.bf16 %v136_v39, %v132_v37  ;;  %v135_v44 = vld [vmem:[#allocation5 + $0x60] sm:$0xff]  ;;  %v133_v45 = vld [vmem:[#allocation5 + $0x50] sm:$0xff] }
  0x32   :  { %1933 = vmatprep.subr.bf16.mxu1 %v1932_v30  ;;  %v380_v46 = vld [vmem:[%s2563_s1 + $0x8] sm:$0xff]  ;;  %v1936_v47 = vpack.c.bf16 %v138_v41, %v134_v40  ;;  %v137_v48 = vld [vmem:[#allocation5 + $0x70] sm:$0xff]  ;;  %v1810_v50 = vpack.c.bf16 %v135_v44, %v131_v43  ;;  %v142_v52 = vld [vmem:[#allocation5 + $0x98] sm:$0xff] }
  0x33   :  { %1756 = vmatmul.mubr.msk.f32.vlgmr.msra.gmra.mrb[0].mxu0 %vm411_vm0, %v379_v34  ;;  %v140_v49 = vld [vmem:[#allocation5 + $0x88] sm:$0xff]  ;;  %v146_v53 = vld [vmem:[#allocation5 + $0xb8] sm:$0xff]  ;;  %v1938_v54 = vpack.c.bf16 %v137_v48, %v133_v45  ;;  %v139_v55 = vld [vmem:[#allocation5 + $0x80] sm:$0xff] }
  0x34   :  { %1772 = vmatmul.mubr.msk.f32.vlgmr.msra.gmra.mrb[0].mxu1 %vm411_vm0, %v379_v34  ;;  %1807 = vmatpush1.bf16.msra.mxu0 %v1806_v35  ;;  %v144_v51 = vld [vmem:[#allocation5 + $0xa8] sm:$0xff]  ;;  %v143_v56 = vld [vmem:[#allocation5 + $0xa0] sm:$0xff]  ;;  %v141_v58 = vld [vmem:[#allocation5 + $0x90] sm:$0xff]  ;;  %v1940_v60 = vpack.c.bf16 %v146_v53, %v142_v52 }
  0x35   :  { %1935 = vmatpush1.bf16.msra.mxu1 %v1934_v38  ;;  %530 = vmatprep.mubr.f32.mxu0 %v2296_v0  ;;  %v1812_v57 = vpack.c.bf16 %v144_v51, %v140_v49  ;;  %v145_v59 = vld [vmem:[#allocation5 + $0xb0] sm:$0xff]  ;;  %v148_v61 = vld [vmem:[#allocation5 + $0xc8] sm:$0xff]  ;;  %v1814_v1 = vpack.c.bf16 %v143_v56, %v139_v55  ;;  %v150_v2 = vld [vmem:[#allocation5 + $0xd8] sm:$0xff] }
  0x36   :  { %691 = vmatprep.mubr.f32.mxu1 %v2296_v0  ;;  %1809 = vmatprep.subr.bf16.mxu0 %v1808_v42  ;;  %v152_v62 = vld [vmem:[#allocation5 + $0xe8] sm:$0xff]  ;;  %v381_v63 = vld [vmem:[%s2563_s1 + $0x10] sm:$0xff]  ;;  %v154_v3 = vld [vmem:[#allocation5 + $0xf8] sm:$0xff]  ;;  %v1942_v4 = vpack.c.bf16 %v145_v59, %v141_v58 }
  0x37   :  { %1757 = vmatmul.mubr.msk.f32.gmra.mrb[2].mxu0 %vm411_vm0, %v380_v46  ;;  %1937 = vmatprep.subr.bf16.mxu1 %v1936_v47  ;;  %v147_v5 = vld [vmem:[#allocation5 + $0xc0] sm:$0xff]  ;;  %v1816_v7 = vpack.c.bf16 %v152_v62, %v148_v61  ;;  %v149_v8 = vld [vmem:[#allocation5 + $0xd0] sm:$0xff]  ;;  %v1944_v10 = vpack.c.bf16 %v154_v3, %v150_v2  ;;  %v156_v11 = vld [vmem:[#allocation5 + $0x108] sm:$0xff] }
  0x38   :  { %1773 = vmatmul.mubr.msk.f32.gmra.mrb[2].mxu1 %vm411_vm0, %v380_v46  ;;  %1811 = vmatpush1.bf16.msra.mxu0 %v1810_v50  ;;  %v151_v6 = vld [vmem:[#allocation5 + $0xe0] sm:$0xff]  ;;  %v153_v9 = vld [vmem:[#allocation5 + $0xf0] sm:$0xff]  ;;  %v160_v12 = vld [vmem:[#allocation5 + $0x128] sm:$0xff] }
  0x39   :  { %1939 = vmatpush1.bf16.msra.mxu1 %v1938_v54  ;;  %536 = vmatprep.mubr.f32.mxu0 %v2296_v0  ;;  %v382_v13 = vld [vmem:[%s2563_s1 + $0x18] sm:$0xff]  ;;  %v1818_v14 = vpack.c.bf16 %v151_v6, %v147_v5  ;;  %v1946_v17 = vpack.c.bf16 %v153_v9, %v149_v8  ;;  %v155_v18 = vld [vmem:[#allocation5 + $0x100] sm:$0xff]  ;;  %v1820_v20 = vpack.c.bf16 %v160_v12, %v156_v11  ;;  %v157_v21 = vld [vmem:[#allocation5 + $0x110] sm:$0xff] }
  0x3a   :  { %697 = vmatprep.mubr.f32.mxu1 %v2296_v0  ;;  %1813 = vmatprep.subr.bf16.mxu0 %v1812_v57  ;;  %v158_v15 = vld [vmem:[#allocation5 + $0x118] sm:$0xff]  ;;  %v159_v19 = vld [vmem:[#allocation5 + $0x120] sm:$0xff]  ;;  %v161_v22 = vld [vmem:[#allocation5 + $0x130] sm:$0xff] }
  0x3b   :  { %1758 = vmatmul.mubr.msk.f32.gmra.mrb[4].mxu0 %vm411_vm0, %v381_v63  ;;  %1941 = vmatprep.subr.bf16.mxu1 %v1940_v60  ;;  %v162_v16 = vld [vmem:[#allocation5 + $0x138] sm:$0xff]  ;;  %v164_v24 = vld [vmem:[#allocation5 + $0x148] sm:$0xff]  ;;  %v383_v26 = vld [vmem:[%s2563_s1 + $0x20] sm:$0xff]  ;;  %v1822_v27 = vpack.c.bf16 %v159_v19, %v155_v18  ;;  %v1950_v30 = vpack.c.bf16 %v161_v22, %v157_v21 }
  0x3c   :  { %1774 = vmatmul.mubr.msk.f32.gmra.mrb[4].mxu1 %vm411_vm0, %v381_v63  ;;  %1815 = vmatpush1.bf16.msra.mxu0 %v1814_v1  ;;  %v1948_v23 = vpack.c.bf16 %v162_v16, %v158_v15  ;;  %v168_v25 = vld [vmem:[#allocation5 + $0x168] sm:$0xff]  ;;  %v166_v28 = vld [vmem:[#allocation5 + $0x158] sm:$0xff]  ;;  %v163_v31 = vld [vmem:[#allocation5 + $0x140] sm:$0xff] }
  0x3d   :  { %1943 = vmatpush1.bf16.msra.mxu1 %v1942_v4  ;;  %542 = vmatprep.mubr.f32.mxu0 %v2296_v0  ;;  %v170_v29 = vld [vmem:[#allocation5 + $0x178] sm:$0xff]  ;;  %v167_v32 = vld [vmem:[#allocation5 + $0x160] sm:$0xff]  ;;  %v1824_v33 = vpack.c.bf16 %v168_v25, %v164_v24  ;;  %v165_v34 = vld [vmem:[#allocation5 + $0x150] sm:$0xff] }
  0x3e   :  { %703 = vmatprep.mubr.f32.mxu1 %v2296_v0  ;;  %1817 = vmatprep.subr.bf16.mxu0 %v1816_v7  ;;  %v169_v35 = vld [vmem:[#allocation5 + $0x170] sm:$0xff]  ;;  %v1952_v36 = vpack.c.bf16 %v170_v29, %v166_v28  ;;  %v172_v37 = vld [vmem:[#allocation5 + $0x188] sm:$0xff]  ;;  %v1826_v40 = vpack.c.bf16 %v167_v32, %v163_v31  ;;  %v174_v41 = vld [vmem:[#allocation5 + $0x198] sm:$0xff] }
  0x3f   :  { %1759 = vmatmul.mubr.msk.f32.gmra.mrb[6].mxu0 %vm411_vm0, %v382_v13  ;;  %1945 = vmatprep.subr.bf16.mxu1 %v1944_v10  ;;  %v176_v38 = vld [vmem:[#allocation5 + $0x1a8] sm:$0xff]  ;;  %v178_v42 = vld [vmem:[#allocation5 + $0x1b8] sm:$0xff]  ;;  %v1954_v43 = vpack.c.bf16 %v169_v35, %v165_v34  ;;  %v171_v44 = vld [vmem:[#allocation5 + $0x180] sm:$0xff] }
  0x40   :  { %1775 = vmatmul.mubr.msk.f32.gmra.mrb[6].mxu1 %vm411_vm0, %v382_v13  ;;  %1819 = vmatpush1.bf16.msra.mxu0 %v1818_v14  ;;  %v384_v39 = vld [vmem:[%s2563_s1 + $0x28] sm:$0xff]  ;;  %v175_v45 = vld [vmem:[#allocation5 + $0x1a0] sm:$0xff]  ;;  %v1828_v46 = vpack.c.bf16 %v176_v38, %v172_v37  ;;  %v173_v47 = vld [vmem:[#allocation5 + $0x190] sm:$0xff]  ;;  %v1956_v49 = vpack.c.bf16 %v178_v42, %v174_v41 }
  0x41   :  { %1947 = vmatpush1.bf16.msra.mxu1 %v1946_v17  ;;  %548 = vmatprep.mubr.f32.mxu0 %v2296_v0  ;;  %v177_v48 = vld [vmem:[#allocation5 + $0x1b0] sm:$0xff]  ;;  %v180_v50 = vld [vmem:[#allocation5 + $0x1c8] sm:$0xff]  ;;  %v1830_v53 = vpack.c.bf16 %v175_v45, %v171_v44  ;;  %v182_v54 = vld [vmem:[#allocation5 + $0x1d8] sm:$0xff] }
  0x42   :  { %709 = vmatprep.mubr.f32.mxu1 %v2296_v0  ;;  %1821 = vmatprep.subr.bf16.mxu0 %v1820_v20  ;;  %v184_v51 = vld [vmem:[#allocation5 + $0x1e8] sm:$0xff]  ;;  %v385_v52 = vld [vmem:[%s2563_s1 + $0x30] sm:$0xff]  ;;  %v186_v55 = vld [vmem:[#allocation5 + $0x1f8] sm:$0xff]  ;;  %v1958_v56 = vpack.c.bf16 %v177_v48, %v173_v47 }
  0x43   :  { %1760 = vmatmul.mubr.msk.f32.gmra.mrb[8].mxu0 %vm411_vm0, %v383_v26  ;;  %1949 = vmatprep.subr.bf16.mxu1 %v1948_v23  ;;  %v179_v57 = vld [vmem:[#allocation5 + $0x1c0] sm:$0xff]  ;;  %v1832_v59 = vpack.c.bf16 %v184_v51, %v180_v50  ;;  %v181_v60 = vld [vmem:[#allocation5 + $0x1d0] sm:$0xff]  ;;  %v1960_v62 = vpack.c.bf16 %v186_v55, %v182_v54  ;;  %v188_v63 = vld [vmem:[#allocation5 + $0x208] sm:$0xff] }
  0x44   :  { %1776 = vmatmul.mubr.msk.f32.gmra.mrb[8].mxu1 %vm411_vm0, %v383_v26  ;;  %1823 = vmatpush1.bf16.msra.mxu0 %v1822_v27  ;;  %v183_v58 = vld [vmem:[#allocation5 + $0x1e0] sm:$0xff]  ;;  %v185_v61 = vld [vmem:[#allocation5 + $0x1f0] sm:$0xff]  ;;  %v192_v1 = vld [vmem:[#allocation5 + $0x228] sm:$0xff] }
  0x45   :  { %1951 = vmatpush1.bf16.msra.mxu1 %v1950_v30  ;;  %554 = vmatprep.mubr.f32.mxu0 %v2296_v0  ;;  %v386_v2 = vld [vmem:[%s2563_s1 + $0x38] sm:$0xff]  ;;  %v1834_v3 = vpack.c.bf16 %v183_v58, %v179_v57  ;;  %v1962_v6 = vpack.c.bf16 %v185_v61, %v181_v60  ;;  %v187_v7 = vld [vmem:[#allocation5 + $0x200] sm:$0xff]  ;;  %v1836_v9 = vpack.c.bf16 %v192_v1, %v188_v63  ;;  %v189_v10 = vld [vmem:[#allocation5 + $0x210] sm:$0xff] }
  0x46   :  { %715 = vmatprep.mubr.f32.mxu1 %v2296_v0  ;;  %1825 = vmatprep.subr.bf16.mxu0 %v1824_v33  ;;  %v190_v4 = vld [vmem:[#allocation5 + $0x218] sm:$0xff]  ;;  %v191_v8 = vld [vmem:[#allocation5 + $0x220] sm:$0xff]  ;;  %v193_v11 = vld [vmem:[#allocation5 + $0x230] sm:$0xff] }
  0x47   :  { %1761 = vmatmul.mubr.msk.f32.gmra.mrb[10].mxu0 %vm411_vm0, %v384_v39  ;;  %1953 = vmatprep.subr.bf16.mxu1 %v1952_v36  ;;  %v194_v5 = vld [vmem:[#allocation5 + $0x238] sm:$0xff]  ;;  %v196_v13 = vld [vmem:[#allocation5 + $0x248] sm:$0xff]  ;;  %v387_v15 = vld [vmem:[%s2563_s1 + $0x40] sm:$0xff]  ;;  %v1838_v16 = vpack.c.bf16 %v191_v8, %v187_v7  ;;  %v1966_v19 = vpack.c.bf16 %v193_v11, %v189_v10 }
  0x48   :  { %1777 = vmatmul.mubr.msk.f32.gmra.mrb[10].mxu1 %vm411_vm0, %v384_v39  ;;  %1827 = vmatpush1.bf16.msra.mxu0 %v1826_v40  ;;  %v1964_v12 = vpack.c.bf16 %v194_v5, %v190_v4  ;;  %v200_v14 = vld [vmem:[#allocation5 + $0x268] sm:$0xff]  ;;  %v198_v17 = vld [vmem:[#allocation5 + $0x258] sm:$0xff]  ;;  %v195_v20 = vld [vmem:[#allocation5 + $0x240] sm:$0xff] }
  0x49   :  { %1955 = vmatpush1.bf16.msra.mxu1 %v1954_v43  ;;  %560 = vmatprep.mubr.f32.mxu0 %v2296_v0  ;;  %v202_v18 = vld [vmem:[#allocation5 + $0x278] sm:$0xff]  ;;  %v199_v21 = vld [vmem:[#allocation5 + $0x260] sm:$0xff]  ;;  %v1840_v22 = vpack.c.bf16 %v200_v14, %v196_v13  ;;  %v197_v23 = vld [vmem:[#allocation5 + $0x250] sm:$0xff] }
  0x4a   :  { %721 = vmatprep.mubr.f32.mxu1 %v2296_v0  ;;  %1829 = vmatprep.subr.bf16.mxu0 %v1828_v46  ;;  %v201_v24 = vld [vmem:[#allocation5 + $0x270] sm:$0xff]  ;;  %v1968_v25 = vpack.c.bf16 %v202_v18, %v198_v17  ;;  %v204_v26 = vld [vmem:[#allocation5 + $0x288] sm:$0xff]  ;;  %v1842_v29 = vpack.c.bf16 %v199_v21, %v195_v20  ;;  %v206_v30 = vld [vmem:[#allocation5 + $0x298] sm:$0xff] }
  0x4b   :  { %1762 = vmatmul.mubr.msk.f32.gmra.mrb[12].mxu0 %vm411_vm0, %v385_v52  ;;  %1957 = vmatprep.subr.bf16.mxu1 %v1956_v49  ;;  %v208_v27 = vld [vmem:[#allocation5 + $0x2a8] sm:$0xff]  ;;  %v210_v31 = vld [vmem:[#allocation5 + $0x2b8] sm:$0xff]  ;;  %v1970_v32 = vpack.c.bf16 %v201_v24, %v197_v23  ;;  %v203_v33 = vld [vmem:[#allocation5 + $0x280] sm:$0xff] }
  0x4c   :  { %1778 = vmatmul.mubr.msk.f32.gmra.mrb[12].mxu1 %vm411_vm0, %v385_v52  ;;  %1831 = vmatpush1.bf16.msra.mxu0 %v1830_v53  ;;  %v388_v28 = vld [vmem:[%s2563_s1 + $0x48] sm:$0xff]  ;;  %v207_v34 = vld [vmem:[#allocation5 + $0x2a0] sm:$0xff]  ;;  %v1844_v35 = vpack.c.bf16 %v208_v27, %v204_v26  ;;  %v205_v36 = vld [vmem:[#allocation5 + $0x290] sm:$0xff]  ;;  %v1972_v38 = vpack.c.bf16 %v210_v31, %v206_v30 }
  0x4d   :  { %1959 = vmatpush1.bf16.msra.mxu1 %v1958_v56  ;;  %566 = vmatprep.mubr.f32.mxu0 %v2296_v0  ;;  %v209_v37 = vld [vmem:[#allocation5 + $0x2b0] sm:$0xff]  ;;  %v212_v39 = vld [vmem:[#allocation5 + $0x2c8] sm:$0xff]  ;;  %v1846_v42 = vpack.c.bf16 %v207_v34, %v203_v33  ;;  %v214_v43 = vld [vmem:[#allocation5 + $0x2d8] sm:$0xff] }
  0x4e   :  { %727 = vmatprep.mubr.f32.mxu1 %v2296_v0  ;;  %1833 = vmatprep.subr.bf16.mxu0 %v1832_v59  ;;  %v216_v40 = vld [vmem:[#allocation5 + $0x2e8] sm:$0xff]  ;;  %v389_v41 = vld [vmem:[%s2563_s1 + $0x50] sm:$0xff]  ;;  %v218_v44 = vld [vmem:[#allocation5 + $0x2f8] sm:$0xff]  ;;  %v1974_v45 = vpack.c.bf16 %v209_v37, %v205_v36 }
  0x4f   :  { %1763 = vmatmul.mubr.msk.f32.gmra.mrb[14].mxu0 %vm411_vm0, %v386_v2  ;;  %1961 = vmatprep.subr.bf16.mxu1 %v1960_v62  ;;  %v211_v46 = vld [vmem:[#allocation5 + $0x2c0] sm:$0xff]  ;;  %v1848_v48 = vpack.c.bf16 %v216_v40, %v212_v39  ;;  %v213_v49 = vld [vmem:[#allocation5 + $0x2d0] sm:$0xff]  ;;  %v1976_v51 = vpack.c.bf16 %v218_v44, %v214_v43  ;;  %v220_v52 = vld [vmem:[#allocation5 + $0x308] sm:$0xff] }
  0x50   :  { %1779 = vmatmul.mubr.msk.f32.gmra.mrb[14].mxu1 %vm411_vm0, %v386_v2  ;;  %1835 = vmatpush1.bf16.msra.mxu0 %v1834_v3  ;;  %v215_v47 = vld [vmem:[#allocation5 + $0x2e0] sm:$0xff]  ;;  %v217_v50 = vld [vmem:[#allocation5 + $0x2f0] sm:$0xff]  ;;  %v224_v53 = vld [vmem:[#allocation5 + $0x328] sm:$0xff] }
  0x51   :  { %1963 = vmatpush1.bf16.msra.mxu1 %v1962_v6  ;;  %572 = vmatprep.mubr.f32.mxu0 %v2296_v0  ;;  %v390_v54 = vld [vmem:[%s2563_s1 + $0x58] sm:$0xff]  ;;  %v1850_v55 = vpack.c.bf16 %v215_v47, %v211_v46  ;;  %v1978_v58 = vpack.c.bf16 %v217_v50, %v213_v49  ;;  %v219_v59 = vld [vmem:[#allocation5 + $0x300] sm:$0xff]  ;;  %v1852_v61 = vpack.c.bf16 %v224_v53, %v220_v52  ;;  %v221_v62 = vld [vmem:[#allocation5 + $0x310] sm:$0xff] }
  0x52   :  { %733 = vmatprep.mubr.f32.mxu1 %v2296_v0  ;;  %1837 = vmatprep.subr.bf16.mxu0 %v1836_v9  ;;  %v222_v56 = vld [vmem:[#allocation5 + $0x318] sm:$0xff]  ;;  %v223_v60 = vld [vmem:[#allocation5 + $0x320] sm:$0xff]  ;;  %v225_v63 = vld [vmem:[#allocation5 + $0x330] sm:$0xff] }
  0x53   :  { %1764 = vmatmul.mubr.msk.f32.gmra.mrb[16].mxu0 %vm411_vm0, %v387_v15  ;;  %1965 = vmatprep.subr.bf16.mxu1 %v1964_v12  ;;  %v226_v57 = vld [vmem:[#allocation5 + $0x338] sm:$0xff]  ;;  %v228_v2 = vld [vmem:[#allocation5 + $0x348] sm:$0xff]  ;;  %v391_v4 = vld [vmem:[%s2563_s1 + $0x60] sm:$0xff]  ;;  %v1854_v5 = vpack.c.bf16 %v223_v60, %v219_v59  ;;  %v1982_v8 = vpack.c.bf16 %v225_v63, %v221_v62 }
  0x54   :  { %1780 = vmatmul.mubr.msk.f32.gmra.mrb[16].mxu1 %vm411_vm0, %v387_v15  ;;  %1839 = vmatpush1.bf16.msra.mxu0 %v1838_v16  ;;  %v1980_v1 = vpack.c.bf16 %v226_v57, %v222_v56  ;;  %v232_v3 = vld [vmem:[#allocation5 + $0x368] sm:$0xff]  ;;  %v230_v6 = vld [vmem:[#allocation5 + $0x358] sm:$0xff]  ;;  %v227_v9 = vld [vmem:[#allocation5 + $0x340] sm:$0xff] }
  0x55   :  { %1967 = vmatpush1.bf16.msra.mxu1 %v1966_v19  ;;  %578 = vmatprep.mubr.f32.mxu0 %v2296_v0  ;;  %v234_v7 = vld [vmem:[#allocation5 + $0x378] sm:$0xff]  ;;  %v231_v10 = vld [vmem:[#allocation5 + $0x360] sm:$0xff]  ;;  %v1856_v11 = vpack.c.bf16 %v232_v3, %v228_v2  ;;  %v229_v12 = vld [vmem:[#allocation5 + $0x350] sm:$0xff] }
  0x56   :  { %739 = vmatprep.mubr.f32.mxu1 %v2296_v0  ;;  %1841 = vmatprep.subr.bf16.mxu0 %v1840_v22  ;;  %v233_v13 = vld [vmem:[#allocation5 + $0x370] sm:$0xff]  ;;  %v1984_v14 = vpack.c.bf16 %v234_v7, %v230_v6  ;;  %v236_v15 = vld [vmem:[#allocation5 + $0x388] sm:$0xff]  ;;  %v1858_v18 = vpack.c.bf16 %v231_v10, %v227_v9  ;;  %v238_v19 = vld [vmem:[#allocation5 + $0x398] sm:$0xff] }
  0x57   :  { %1765 = vmatmul.mubr.msk.f32.gmra.mrb[18].mxu0 %vm411_vm0, %v388_v28  ;;  %1969 = vmatprep.subr.bf16.mxu1 %v1968_v25  ;;  %v240_v16 = vld [vmem:[#allocation5 + $0x3a8] sm:$0xff]  ;;  %v242_v20 = vld [vmem:[#allocation5 + $0x3b8] sm:$0xff]  ;;  %v1986_v21 = vpack.c.bf16 %v233_v13, %v229_v12  ;;  %v235_v22 = vld [vmem:[#allocation5 + $0x380] sm:$0xff] }
  0x58   :  { %1781 = vmatmul.mubr.msk.f32.gmra.mrb[18].mxu1 %vm411_vm0, %v388_v28  ;;  %1843 = vmatpush1.bf16.msra.mxu0 %v1842_v29  ;;  %v392_v17 = vld [vmem:[%s2563_s1 + $0x68] sm:$0xff]  ;;  %v239_v23 = vld [vmem:[#allocation5 + $0x3a0] sm:$0xff]  ;;  %v1860_v24 = vpack.c.bf16 %v240_v16, %v236_v15  ;;  %v237_v25 = vld [vmem:[#allocation5 + $0x390] sm:$0xff]  ;;  %v1988_v27 = vpack.c.bf16 %v242_v20, %v238_v19 }
  0x59   :  { %1971 = vmatpush1.bf16.msra.mxu1 %v1970_v32  ;;  %584 = vmatprep.mubr.f32.mxu0 %v2296_v0  ;;  %v241_v26 = vld [vmem:[#allocation5 + $0x3b0] sm:$0xff]  ;;  %v244_v28 = vld [vmem:[#allocation5 + $0x3c8] sm:$0xff]  ;;  %v1862_v31 = vpack.c.bf16 %v239_v23, %v235_v22  ;;  %v246_v32 = vld [vmem:[#allocation5 + $0x3d8] sm:$0xff] }
  0x5a   :  { %745 = vmatprep.mubr.f32.mxu1 %v2296_v0  ;;  %1845 = vmatprep.subr.bf16.mxu0 %v1844_v35  ;;  %v248_v29 = vld [vmem:[#allocation5 + $0x3e8] sm:$0xff]  ;;  %v393_v30 = vld [vmem:[%s2563_s1 + $0x70] sm:$0xff]  ;;  %v250_v33 = vld [vmem:[#allocation5 + $0x3f8] sm:$0xff]  ;;  %v1990_v34 = vpack.c.bf16 %v241_v26, %v237_v25 }
  0x5b   :  { %1766 = vmatmul.mubr.msk.f32.gmra.mrb[20].mxu0 %vm411_vm0, %v389_v41  ;;  %1973 = vmatprep.subr.bf16.mxu1 %v1972_v38  ;;  %v243_v35 = vld [vmem:[#allocation5 + $0x3c0] sm:$0xff]  ;;  %v1864_v37 = vpack.c.bf16 %v248_v29, %v244_v28  ;;  %v245_v38 = vld [vmem:[#allocation5 + $0x3d0] sm:$0xff]  ;;  %v1992_v40 = vpack.c.bf16 %v250_v33, %v246_v32  ;;  %v394_v43 = vld [vmem:[%s2563_s1 + $0x78] sm:$0xff]  ;;  %s2298_s1 = smov [#allocation7]  }
  0x5c   :  { %1782 = vmatmul.mubr.msk.f32.gmra.mrb[20].mxu1 %vm411_vm0, %v389_v41  ;;  %1847 = vmatpush1.bf16.msra.mxu0 %v1846_v42  ;;  %v247_v36 = vld [vmem:[#allocation5 + $0x3e0] sm:$0xff]  ;;  %v249_v39 = vld [vmem:[#allocation5 + $0x3f0] sm:$0xff]  ;;  %v252_v41 = vld [vmem:[#allocation5 + $0x408] sm:$0xff]  ;;  %s1732_s25 = sshll.u32 %s2298_s1, 4  ;;  %s1733_s25 = int_to_ptr.vmem [resolvable:$true] %s1732_s25 }
  0x5d   :  { %1975 = vmatpush1.bf16.msra.mxu1 %v1974_v45  ;;  %590 = vmatprep.mubr.f32.mxu0 %v2296_v0  ;;  %v256_v42 = vld [vmem:[#allocation5 + $0x428] sm:$0xff]  ;;  %v1866_v44 = vpack.c.bf16 %v247_v36, %v243_v35  ;;  %v254_v45 = vld [vmem:[#allocation5 + $0x418] sm:$0xff]  ;;  %v1994_v47 = vpack.c.bf16 %v249_v39, %v245_v38  ;;  %v255_v49 = vld [vmem:[#allocation5 + $0x420] sm:$0xff]  ;;  %s2240_s28 = scalar_lea.vmem %s1733_s25, 64  ;;  %p2245_p3 = scmp.lt.s32.totalorder %s1733_s25, %s1733_s25 }
  0x5e   :  { %751 = vmatprep.mubr.f32.mxu1 %v2296_v0  ;;  %1849 = vmatprep.subr.bf16.mxu0 %v1848_v48  ;;  %v258_v46 = vld [vmem:[#allocation5 + $0x438] sm:$0xff]  ;;  %v251_v48 = vld [vmem:[#allocation5 + $0x400] sm:$0xff]  ;;  %v60_v50 = vld [vmem:[#allocation2 + $0x8] sm:$0xff]  ;;  %p2241_p2 = scmp.ne.s32.totalorder %s1733_s25, %s2240_s28  ;;  %p2246_p4 = scmp.lt.s32.totalorder %s2240_s28, %s2240_s28 }
  0x5f   :  { %1767 = vmatmul.mubr.msk.f32.gmra.mrb[22].mxu0 %vm411_vm0, %v390_v54  ;;  %1977 = vmatprep.subr.bf16.mxu1 %v1976_v51  ;;  %v1868_v51 = vpack.c.bf16 %v256_v42, %v252_v41  ;;  %v253_v52 = vld [vmem:[#allocation5 + $0x410] sm:$0xff]  ;;  %v264_v56 = vld [vmem:[#allocation5 + $0x468] sm:$0xff]  ;;  %v59_v57 = vld [vmem:[#allocation2] sm:$0xff] }
  0x60   :  { %1783 = vmatmul.mubr.msk.f32.gmra.mrb[22].mxu1 %vm411_vm0, %v390_v54  ;;  %1851 = vmatpush1.bf16.msra.mxu0 %v1850_v55  ;;  %v257_v53 = vld [vmem:[#allocation5 + $0x430] sm:$0xff]  ;;  %v1996_v54 = vpack.c.bf16 %v258_v46, %v254_v45  ;;  %v260_v55 = vld [vmem:[#allocation5 + $0x448] sm:$0xff]  ;;  %v262_v59 = vld [vmem:[#allocation5 + $0x458] sm:$0xff]  ;;  %p2247_p5 = por %p2246_p4, %p2245_p3 }
  0x61   :  { %1979 = vmatpush1.bf16.msra.mxu1 %v1978_v58  ;;  %596 = vmatprep.mubr.f32.mxu0 %v2296_v0  ;;  %v1870_v58 = vpack.c.bf16 %v255_v49, %v251_v48  ;;  %v266_v60 = vld [vmem:[#allocation5 + $0x478] sm:$0xff]  ;;  %v259_v62 = vld [vmem:[#allocation5 + $0x440] sm:$0xff]  ;;  %v1872_v2 = vpack.c.bf16 %v264_v56, %v260_v55  ;;  %v261_v3 = vld [vmem:[#allocation5 + $0x450] sm:$0xff] }
  0x62   :  { %757 = vmatprep.mubr.f32.mxu1 %v2296_v0  ;;  %1853 = vmatprep.subr.bf16.mxu0 %v1852_v61  ;;  %v1998_v61 = vpack.c.bf16 %v257_v53, %v253_v52  ;;  %v263_v63 = vld [vmem:[#allocation5 + $0x460] sm:$0xff]  ;;  %v268_v6 = vld [vmem:[#allocation5 + $0x488] sm:$0xff]  ;;  %v270_v10 = vld [vmem:[#allocation5 + $0x498] sm:$0xff]  ;;  %p2248_p6 = pnand %p2247_p5, %p2241_p2 }
  0x63   :  { %1768 = vmatmul.mubr.msk.f32.gmra.mrb[24].mxu0 %vm411_vm0, %v391_v4  ;;  %1981 = vmatprep.subr.bf16.mxu1 %v1980_v1  ;;  %v64_v1 = vld [vmem:[#allocation2 + $0x28] sm:$0xff]  ;;  %v1874_v9 = vpack.c.bf16 %v263_v63, %v259_v62  ;;  %v267_v13 = vld [vmem:[#allocation5 + $0x480] sm:$0xff]  ;;  %v282_v25 = vld [vmem:[#allocation5 + $0x4f8] sm:$0xff] }
  0x64   :  { %1784 = vmatmul.mubr.msk.f32.gmra.mrb[24].mxu1 %vm411_vm0, %v391_v4  ;;  %1855 = vmatpush1.bf16.msra.mxu0 %v1854_v5  ;;  %v265_v4 = vld [vmem:[#allocation5 + $0x470] sm:$0xff]  ;;  %v2000_v5 = vpack.c.bf16 %v266_v60, %v262_v59  ;;  %v272_v7 = vld [vmem:[#allocation5 + $0x4a8] sm:$0xff]  ;;  %v67_v22 = vld [vmem:[#allocation2 + $0x40] sm:$0xff] }
  0x65   :  { %1983 = vmatpush1.bf16.msra.mxu1 %v1982_v8  ;;  %602 = vmatprep.mubr.f32.mxu0 %v2296_v0  ;;  %v63_v8 = vld [vmem:[#allocation2 + $0x20] sm:$0xff]  ;;  %v2002_v12 = vpack.c.bf16 %v265_v4, %v261_v3  ;;  %v68_v15 = vld [vmem:[#allocation2 + $0x48] sm:$0xff]  ;;  %v1876_v16 = vpack.c.bf16 %v272_v7, %v268_v6  ;;  %v281_v32 = vld [vmem:[#allocation5 + $0x4f0] sm:$0xff] }
  0x66   :  { %763 = vmatprep.mubr.f32.mxu1 %v2296_v0  ;;  %1857 = vmatprep.subr.bf16.mxu0 %v1856_v11  ;;  %v274_v11 = vld [vmem:[#allocation5 + $0x4b8] sm:$0xff]  ;;  %v276_v20 = vld [vmem:[#allocation5 + $0x4c8] sm:$0xff]  ;;  %v279_v28 = vld [vmem:[#allocation5 + $0x4e0] sm:$0xff] }
  0x67   :  { %1769 = vmatmul.mubr.msk.f32.gmra.mrb[26].mxu0 %vm411_vm0, %v392_v17  ;;  %1985 = vmatprep.subr.bf16.mxu1 %v1984_v14  ;;  %v271_v14 = vld [vmem:[#allocation5 + $0x4a0] sm:$0xff]  ;;  %v2004_v19 = vpack.c.bf16 %v274_v11, %v270_v10  ;;  %v72_v29 = vld [vmem:[#allocation2 + $0x68] sm:$0xff]  ;;  %v286_v38 = vld [vmem:[#allocation5 + $0x518] sm:$0xff] }
  0x68   :  { %1785 = vmatmul.mubr.msk.f32.gmra.mrb[26].mxu1 %vm411_vm0, %v392_v17  ;;  %1859 = vmatpush1.bf16.msra.mxu0 %v1858_v18  ;;  %v269_v17 = vld [vmem:[#allocation5 + $0x490] sm:$0xff]  ;;  %v1878_v23 = vpack.c.bf16 %v271_v14, %v267_v13  ;;  %v288_v35 = vld [vmem:[#allocation5 + $0x528] sm:$0xff]  ;;  %v71_v36 = vld [vmem:[#allocation2 + $0x60] sm:$0xff] }
  0x69   :  { %1987 = vmatpush1.bf16.msra.mxu1 %v1986_v21  ;;  %608 = vmatprep.mubr.f32.mxu0 %v2296_v0  ;;  %v273_v18 = vld [vmem:[#allocation5 + $0x4b0] sm:$0xff]  ;;  %v280_v21 = vld [vmem:[#allocation5 + $0x4e8] sm:$0xff]  ;;  %v290_v39 = vld [vmem:[#allocation5 + $0x538] sm:$0xff] }
  0x6a   :  { %769 = vmatprep.mubr.f32.mxu1 %v2296_v0  ;;  %1861 = vmatprep.subr.bf16.mxu0 %v1860_v24  ;;  %v278_v24 = vld [vmem:[#allocation5 + $0x4d8] sm:$0xff]  ;;  %v2006_v26 = vpack.c.bf16 %v273_v18, %v269_v17  ;;  %v283_v41 = vld [vmem:[#allocation5 + $0x500] sm:$0xff]  ;;  %v285_v45 = vld [vmem:[#allocation5 + $0x510] sm:$0xff] }
  0x6b   :  { %1770 = vmatmul.mubr.msk.f32.gmra.mrb[28].mxu0 %vm411_vm0, %v393_v30  ;;  %1989 = vmatprep.subr.bf16.mxu1 %v1988_v27  ;;  %v275_v27 = vld [vmem:[#allocation5 + $0x4c0] sm:$0xff]  ;;  %v2008_v33 = vpack.c.bf16 %v282_v25, %v278_v24  ;;  %v289_v46 = vld [vmem:[#allocation5 + $0x530] sm:$0xff]  ;;  %v292_v48 = vld [vmem:[#allocation5 + $0x548] sm:$0xff] }
  0x6c   :  { %1786 = vmatmul.mubr.msk.f32.gmra.mrb[28].mxu1 %vm411_vm0, %v393_v30  ;;  %1863 = vmatpush1.bf16.msra.mxu0 %v1862_v31  ;;  %v1880_v30 = vpack.c.bf16 %v280_v21, %v276_v20  ;;  %v277_v31 = vld [vmem:[#allocation5 + $0x4d0] sm:$0xff]  ;;  %v287_v42 = vld [vmem:[#allocation5 + $0x520] sm:$0xff]  ;;  %v296_v49 = vld [vmem:[#allocation5 + $0x568] sm:$0xff] }
  0x6d   :  { %1991 = vmatpush1.bf16.msra.mxu1 %v1990_v34  ;;  %614 = vmatprep.mubr.f32.mxu0 %v2296_v0  ;;  %v284_v34 = vld [vmem:[#allocation5 + $0x508] sm:$0xff]  ;;  %v294_v52 = vld [vmem:[#allocation5 + $0x558] sm:$0xff]  ;;  %v291_v55 = vld [vmem:[#allocation5 + $0x540] sm:$0xff] }
  0x6e   :  { %775 = vmatprep.mubr.f32.mxu1 %v2296_v0  ;;  %1865 = vmatprep.subr.bf16.mxu0 %v1864_v37  ;;  %v1882_v37 = vpack.c.bf16 %v279_v28, %v275_v27  ;;  %v298_v53 = vld [vmem:[#allocation5 + $0x578] sm:$0xff]  ;;  %v295_v56 = vld [vmem:[#allocation5 + $0x560] sm:$0xff]  ;;  %v293_v59 = vld [vmem:[#allocation5 + $0x550] sm:$0xff] }
  0x6f   :  { %1771 = vmatmul.mubr.msk.f32.gmra.mrb[30].mxu0 %vm411_vm0, %v394_v43  ;;  %1993 = vmatprep.subr.bf16.mxu1 %v1992_v40  ;;  %v2010_v40 = vpack.c.bf16 %v281_v32, %v277_v31  ;;  %v297_v60 = vld [vmem:[#allocation5 + $0x570] sm:$0xff]  ;;  %v300_v62 = vld [vmem:[#allocation5 + $0x588] sm:$0xff]  ;;  %v302_v3 = vld [vmem:[#allocation5 + $0x598] sm:$0xff] }
  0x70   :  { %1787 = vmatmul.mubr.msk.f32.gmra.mrb[30].mxu1 %vm411_vm0, %v394_v43  ;;  %1867 = vmatpush1.bf16.msra.mxu0 %v1866_v44  ;;  %v76_v43 = vld [vmem:[#allocation2 + $0x88] sm:$0xff]  ;;  %v1884_v44 = vpack.c.bf16 %v288_v35, %v284_v34  ;;  %v306_v4 = vld [vmem:[#allocation5 + $0x5b8] sm:$0xff]  ;;  %v299_v6 = vld [vmem:[#allocation5 + $0x580] sm:$0xff] }
  0x71   :  { %1995 = vmatpush1.bf16.msra.mxu1 %v1994_v47  ;;  %846 = vmatprep.mubr.f32.mxu0 %v60_v50  ;;  %v2012_v47 = vpack.c.bf16 %v290_v39, %v286_v38  ;;  %v304_v63 = vld [vmem:[#allocation5 + $0x5a8] sm:$0xff]  ;;  %v303_v7 = vld [vmem:[#allocation5 + $0x5a0] sm:$0xff]  ;;  %v301_v10 = vld [vmem:[#allocation5 + $0x590] sm:$0xff] }
  0x72   :  { %1168 = vmatprep.mubr.f32.mxu1 %v60_v50  ;;  %1869 = vmatprep.subr.bf16.mxu0 %v1868_v51  ;;  %v75_v50 = vld [vmem:[#allocation2 + $0x80] sm:$0xff]  ;;  %v1886_v51 = vpack.c.bf16 %v287_v42, %v283_v41  ;;  %v305_v11 = vld [vmem:[#allocation5 + $0x5b0] sm:$0xff]  ;;  %v308_v13 = vld [vmem:[#allocation5 + $0x5c8] sm:$0xff] }
  0x73   :  { %847 = vmatmul.mubr.f32.vlgmr.msra.gmra.mrb[0].mxu0 %v59_v57  ;;  %1997 = vmatprep.subr.bf16.mxu1 %v1996_v54  ;;  %v2014_v54 = vpack.c.bf16 %v289_v46, %v285_v45  ;;  %v312_v14 = vld [vmem:[#allocation5 + $0x5e8] sm:$0xff]  ;;  %v310_v17 = vld [vmem:[#allocation5 + $0x5d8] sm:$0xff]  ;;  %v307_v20 = vld [vmem:[#allocation5 + $0x5c0] sm:$0xff] }
  0x74   :  { %1169 = vmatmul.mubr.f32.vlgmr.msra.gmra.mrb[0].mxu1 %v59_v57  ;;  %1871 = vmatpush1.bf16.msra.mxu0 %v1870_v58  ;;  %v80_v57 = vld [vmem:[#allocation2 + $0xa8] sm:$0xff]  ;;  %v1888_v58 = vpack.c.bf16 %v296_v49, %v292_v48  ;;  %v314_v18 = vld [vmem:[#allocation5 + $0x5f8] sm:$0xff]  ;;  %v311_v21 = vld [vmem:[#allocation5 + $0x5e0] sm:$0xff] }
  0x75   :  { %1999 = vmatpush1.bf16.msra.mxu1 %v1998_v61  ;;  %852 = vmatprep.mubr.f32.mxu0 %v64_v1  ;;  %v2016_v61 = vpack.c.bf16 %v298_v53, %v294_v52  ;;  %v309_v24 = vld [vmem:[#allocation5 + $0x5d0] sm:$0xff]  ;;  %v316_v27 = vld [vmem:[#allocation5 + $0x608] sm:$0xff]  ;;  %v318_v31 = vld [vmem:[#allocation5 + $0x618] sm:$0xff] }
  0x76   :  { %1174 = vmatprep.mubr.f32.mxu1 %v64_v1  ;;  %1873 = vmatprep.subr.bf16.mxu0 %v1872_v2  ;;  %v79_v1 = vld [vmem:[#allocation2 + $0xa0] sm:$0xff]  ;;  %v1890_v2 = vpack.c.bf16 %v295_v56, %v291_v55  ;;  %v313_v25 = vld [vmem:[#allocation5 + $0x5f0] sm:$0xff]  ;;  %v320_v28 = vld [vmem:[#allocation5 + $0x628] sm:$0xff] }
  0x77   :  { %853 = vmatmul.mubr.f32.gmra.mrb[2].mxu0 %v63_v8  ;;  %2001 = vmatprep.subr.bf16.mxu1 %v2000_v5  ;;  %v2018_v5 = vpack.c.bf16 %v297_v60, %v293_v59  ;;  %v322_v32 = vld [vmem:[#allocation5 + $0x638] sm:$0xff]  ;;  %v315_v34 = vld [vmem:[#allocation5 + $0x600] sm:$0xff]  ;;  %v317_v38 = vld [vmem:[#allocation5 + $0x610] sm:$0xff] }
  0x78   :  { %1175 = vmatmul.mubr.f32.gmra.mrb[2].mxu1 %v63_v8  ;;  %1875 = vmatpush1.bf16.msra.mxu0 %v1874_v9  ;;  %v84_v8 = vld [vmem:[#allocation2 + $0xc8] sm:$0xff]  ;;  %v1892_v9 = vpack.c.bf16 %v304_v63, %v300_v62  ;;  %v319_v35 = vld [vmem:[#allocation5 + $0x620] sm:$0xff]  ;;  %v321_v39 = vld [vmem:[#allocation5 + $0x630] sm:$0xff] }
  0x79   :  { %2003 = vmatpush1.bf16.msra.mxu1 %v2002_v12  ;;  %858 = vmatprep.mubr.f32.mxu0 %v68_v15  ;;  %v2020_v12 = vpack.c.bf16 %v306_v4, %v302_v3  ;;  %v324_v41 = vld [vmem:[#allocation5 + $0x648] sm:$0xff]  ;;  %v326_v45 = vld [vmem:[#allocation5 + $0x658] sm:$0xff]  ;;  %v323_v48 = vld [vmem:[#allocation5 + $0x640] sm:$0xff] }
  0x7a   :  { %1180 = vmatprep.mubr.f32.mxu1 %v68_v15  ;;  %1877 = vmatprep.subr.bf16.mxu0 %v1876_v16  ;;  %v83_v15 = vld [vmem:[#allocation2 + $0xc0] sm:$0xff]  ;;  %v1894_v16 = vpack.c.bf16 %v303_v7, %v299_v6  ;;  %v328_v42 = vld [vmem:[#allocation5 + $0x668] sm:$0xff]  ;;  %v330_v46 = vld [vmem:[#allocation5 + $0x678] sm:$0xff] }
  0x7b   :  { %859 = vmatmul.mubr.f32.gmra.mrb[4].mxu0 %v67_v22  ;;  %2005 = vmatprep.subr.bf16.mxu1 %v2004_v19  ;;  %v2022_v19 = vpack.c.bf16 %v305_v11, %v301_v10  ;;  %v327_v49 = vld [vmem:[#allocation5 + $0x660] sm:$0xff]  ;;  %v325_v52 = vld [vmem:[#allocation5 + $0x650] sm:$0xff]  ;;  %v332_v55 = vld [vmem:[#allocation5 + $0x688] sm:$0xff] }
  0x7c   :  { %1181 = vmatmul.mubr.f32.gmra.mrb[4].mxu1 %v67_v22  ;;  %1879 = vmatpush1.bf16.msra.mxu0 %v1878_v23  ;;  %v88_v22 = vld [vmem:[#allocation2 + $0xe8] sm:$0xff]  ;;  %v1896_v23 = vpack.c.bf16 %v312_v14, %v308_v13  ;;  %v329_v53 = vld [vmem:[#allocation5 + $0x670] sm:$0xff]  ;;  %v334_v59 = vld [vmem:[#allocation5 + $0x698] sm:$0xff] }
  0x7d   :  { %2007 = vmatpush1.bf16.msra.mxu1 %v2006_v26  ;;  %864 = vmatprep.mubr.f32.mxu0 %v72_v29  ;;  %v2024_v26 = vpack.c.bf16 %v314_v18, %v310_v17  ;;  %v336_v56 = vld [vmem:[#allocation5 + $0x6a8] sm:$0xff]  ;;  %v338_v60 = vld [vmem:[#allocation5 + $0x6b8] sm:$0xff]  ;;  %v331_v62 = vld [vmem:[#allocation5 + $0x680] sm:$0xff] }
  0x7e   :  { %1186 = vmatprep.mubr.f32.mxu1 %v72_v29  ;;  %1881 = vmatprep.subr.bf16.mxu0 %v1880_v30  ;;  %v87_v29 = vld [vmem:[#allocation2 + $0xe0] sm:$0xff]  ;;  %v1898_v30 = vpack.c.bf16 %v311_v21, %v307_v20  ;;  %v333_v3 = vld [vmem:[#allocation5 + $0x690] sm:$0xff]  ;;  %v340_v6 = vld [vmem:[#allocation5 + $0x6c8] sm:$0xff] }
  0x7f   :  { %865 = vmatmul.mubr.f32.gmra.mrb[6].mxu0 %v71_v36  ;;  %2009 = vmatprep.subr.bf16.mxu1 %v2008_v33  ;;  %v2026_v33 = vpack.c.bf16 %v313_v25, %v309_v24  ;;  %v335_v63 = vld [vmem:[#allocation5 + $0x6a0] sm:$0xff]  ;;  %v337_v4 = vld [vmem:[#allocation5 + $0x6b0] sm:$0xff]  ;;  %v344_v7 = vld [vmem:[#allocation5 + $0x6e8] sm:$0xff] }
  0x80   :  { %1187 = vmatmul.mubr.f32.gmra.mrb[6].mxu1 %v71_v36  ;;  %1883 = vmatpush1.bf16.msra.mxu0 %v1882_v37  ;;  %v92_v36 = vld [vmem:[#allocation2 + $0x108] sm:$0xff]  ;;  %v1900_v37 = vpack.c.bf16 %v320_v28, %v316_v27  ;;  %v342_v10 = vld [vmem:[#allocation5 + $0x6d8] sm:$0xff]  ;;  %v339_v13 = vld [vmem:[#allocation5 + $0x6c0] sm:$0xff] }
  0x81   :  { %2011 = vmatpush1.bf16.msra.mxu1 %v2010_v40  ;;  %870 = vmatprep.mubr.f32.mxu0 %v76_v43  ;;  %v2028_v40 = vpack.c.bf16 %v322_v32, %v318_v31  ;;  %v346_v11 = vld [vmem:[#allocation5 + $0x6f8] sm:$0xff]  ;;  %v343_v14 = vld [vmem:[#allocation5 + $0x6e0] sm:$0xff]  ;;  %v341_v17 = vld [vmem:[#allocation5 + $0x6d0] sm:$0xff] }
  0x82   :  { %1192 = vmatprep.mubr.f32.mxu1 %v76_v43  ;;  %1885 = vmatprep.subr.bf16.mxu0 %v1884_v44  ;;  %v91_v43 = vld [vmem:[#allocation2 + $0x100] sm:$0xff]  ;;  %v1902_v44 = vpack.c.bf16 %v319_v35, %v315_v34  ;;  %v345_v18 = vld [vmem:[#allocation5 + $0x6f0] sm:$0xff]  ;;  %v348_v20 = vld [vmem:[#allocation5 + $0x708] sm:$0xff] }
  0x83   :  { %871 = vmatmul.mubr.f32.gmra.mrb[8].mxu0 %v75_v50  ;;  %2013 = vmatprep.subr.bf16.mxu1 %v2012_v47  ;;  %v2030_v47 = vpack.c.bf16 %v321_v39, %v317_v38  ;;  %v352_v21 = vld [vmem:[#allocation5 + $0x728] sm:$0xff]  ;;  %v350_v24 = vld [vmem:[#allocation5 + $0x718] sm:$0xff]  ;;  %v347_v27 = vld [vmem:[#allocation5 + $0x700] sm:$0xff] }
  0x84   :  { %1193 = vmatmul.mubr.f32.gmra.mrb[8].mxu1 %v75_v50  ;;  %1887 = vmatpush1.bf16.msra.mxu0 %v1886_v51  ;;  %v96_v50 = vld [vmem:[#allocation2 + $0x128] sm:$0xff]  ;;  %v1904_v51 = vpack.c.bf16 %v328_v42, %v324_v41  ;;  %v354_v25 = vld [vmem:[#allocation5 + $0x738] sm:$0xff]  ;;  %v351_v28 = vld [vmem:[#allocation5 + $0x720] sm:$0xff] }
  0x85   :  { %2015 = vmatpush1.bf16.msra.mxu1 %v2014_v54  ;;  %876 = vmatprep.mubr.f32.mxu0 %v80_v57  ;;  %v2032_v54 = vpack.c.bf16 %v330_v46, %v326_v45  ;;  %v349_v31 = vld [vmem:[#allocation5 + $0x710] sm:$0xff]  ;;  %v356_v34 = vld [vmem:[#allocation5 + $0x748] sm:$0xff]  ;;  %v358_v38 = vld [vmem:[#allocation5 + $0x758] sm:$0xff] }
  0x86   :  { %1198 = vmatprep.mubr.f32.mxu1 %v80_v57  ;;  %1889 = vmatprep.subr.bf16.mxu0 %v1888_v58  ;;  %v95_v57 = vld [vmem:[#allocation2 + $0x120] sm:$0xff]  ;;  %v1906_v58 = vpack.c.bf16 %v327_v49, %v323_v48  ;;  %v353_v32 = vld [vmem:[#allocation5 + $0x730] sm:$0xff]  ;;  %v360_v35 = vld [vmem:[#allocation5 + $0x768] sm:$0xff] }
  0x87   :  { %877 = vmatmul.mubr.f32.gmra.mrb[10].mxu0 %v79_v1  ;;  %2017 = vmatprep.subr.bf16.mxu1 %v2016_v61  ;;  %v2034_v61 = vpack.c.bf16 %v329_v53, %v325_v52  ;;  %v362_v39 = vld [vmem:[#allocation5 + $0x778] sm:$0xff]  ;;  %v355_v41 = vld [vmem:[#allocation5 + $0x740] sm:$0xff]  ;;  %v357_v45 = vld [vmem:[#allocation5 + $0x750] sm:$0xff] }
  0x88   :  { %1199 = vmatmul.mubr.f32.gmra.mrb[10].mxu1 %v79_v1  ;;  %1891 = vmatpush1.bf16.msra.mxu0 %v1890_v2  ;;  %v100_v1 = vld [vmem:[#allocation2 + $0x148] sm:$0xff]  ;;  %v1908_v2 = vpack.c.bf16 %v336_v56, %v332_v55  ;;  %v359_v42 = vld [vmem:[#allocation5 + $0x760] sm:$0xff]  ;;  %v361_v46 = vld [vmem:[#allocation5 + $0x770] sm:$0xff] }
  0x89   :  { %2019 = vmatpush1.bf16.msra.mxu1 %v2018_v5  ;;  %882 = vmatprep.mubr.f32.mxu0 %v84_v8  ;;  %v2036_v5 = vpack.c.bf16 %v338_v60, %v334_v59  ;;  %v364_v48 = vld [vmem:[#allocation5 + $0x788] sm:$0xff]  ;;  %v366_v52 = vld [vmem:[#allocation5 + $0x798] sm:$0xff]  ;;  %v363_v55 = vld [vmem:[#allocation5 + $0x780] sm:$0xff] }
  0x8a   :  { %1204 = vmatprep.mubr.f32.mxu1 %v84_v8  ;;  %1893 = vmatprep.subr.bf16.mxu0 %v1892_v9  ;;  %v99_v8 = vld [vmem:[#allocation2 + $0x140] sm:$0xff]  ;;  %v1910_v9 = vpack.c.bf16 %v335_v63, %v331_v62  ;;  %v368_v49 = vld [vmem:[#allocation5 + $0x7a8] sm:$0xff]  ;;  %v370_v53 = vld [vmem:[#allocation5 + $0x7b8] sm:$0xff] }
  0x8b   :  { %883 = vmatmul.mubr.f32.gmra.mrb[12].mxu0 %v83_v15  ;;  %2021 = vmatprep.subr.bf16.mxu1 %v2020_v12  ;;  %v2038_v12 = vpack.c.bf16 %v337_v4, %v333_v3  ;;  %v367_v56 = vld [vmem:[#allocation5 + $0x7a0] sm:$0xff]  ;;  %v365_v59 = vld [vmem:[#allocation5 + $0x790] sm:$0xff]  ;;  %v372_v62 = vld [vmem:[#allocation5 + $0x7c8] sm:$0xff] }
  0x8c   :  { %1205 = vmatmul.mubr.f32.gmra.mrb[12].mxu1 %v83_v15  ;;  %1895 = vmatpush1.bf16.msra.mxu0 %v1894_v16  ;;  %v104_v15 = vld [vmem:[#allocation2 + $0x168] sm:$0xff]  ;;  %v1912_v16 = vpack.c.bf16 %v344_v7, %v340_v6  ;;  %v369_v60 = vld [vmem:[#allocation5 + $0x7b0] sm:$0xff]  ;;  %v374_v3 = vld [vmem:[#allocation5 + $0x7d8] sm:$0xff] }
  0x8d   :  { %2023 = vmatpush1.bf16.msra.mxu1 %v2022_v19  ;;  %888 = vmatprep.mubr.f32.mxu0 %v88_v22  ;;  %v2040_v19 = vpack.c.bf16 %v346_v11, %v342_v10  ;;  %v376_v63 = vld [vmem:[#allocation5 + $0x7e8] sm:$0xff]  ;;  %v378_v4 = vld [vmem:[#allocation5 + $0x7f8] sm:$0xff]  ;;  %v371_v6 = vld [vmem:[#allocation5 + $0x7c0] sm:$0xff] }
  0x8e   :  { %1210 = vmatprep.mubr.f32.mxu1 %v88_v22  ;;  %1897 = vmatprep.subr.bf16.mxu0 %v1896_v23  ;;  %v103_v22 = vld [vmem:[#allocation2 + $0x160] sm:$0xff]  ;;  %v1914_v23 = vpack.c.bf16 %v343_v14, %v339_v13  ;;  %v373_v10 = vld [vmem:[#allocation5 + $0x7d0] sm:$0xff] }
  0x8f   :  { %889 = vmatmul.mubr.f32.gmra.mrb[14].mxu0 %v87_v29  ;;  %2025 = vmatprep.subr.bf16.mxu1 %v2024_v26  ;;  %v2042_v26 = vpack.c.bf16 %v345_v18, %v341_v17  ;;  %v375_v7 = vld [vmem:[#allocation5 + $0x7e0] sm:$0xff]  ;;  %v377_v11 = vld [vmem:[#allocation5 + $0x7f0] sm:$0xff]  ;;  %v66_v18 = vld [vmem:[#allocation2 + $0x38] sm:$0xff] }
  0x90   :  { %1211 = vmatmul.mubr.f32.gmra.mrb[14].mxu1 %v87_v29  ;;  %1899 = vmatpush1.bf16.msra.mxu0 %v1898_v30  ;;  %v108_v29 = vld [vmem:[#allocation2 + $0x188] sm:$0xff]  ;;  %v1916_v30 = vpack.c.bf16 %v352_v21, %v348_v20  ;;  %v119_v13 = vld [vmem:[#allocation2 + $0x1e0] sm:$0xff]  ;;  %v1930_v14 = vpack.c.bf16 %v375_v7, %v371_v6  ;;  %v61_v17 = vld [vmem:[#allocation2 + $0x10] sm:$0xff] }
  0x91   :  { %2027 = vmatpush1.bf16.msra.mxu1 %v2026_v33  ;;  %894 = vmatprep.mubr.f32.mxu0 %v92_v36  ;;  %v2044_v33 = vpack.c.bf16 %v354_v25, %v350_v24  ;;  %v70_v20 = vld [vmem:[#allocation2 + $0x58] sm:$0xff]  ;;  %v69_v21 = vld [vmem:[#allocation2 + $0x50] sm:$0xff] }
  0x92   :  { %1216 = vmatprep.mubr.f32.mxu1 %v92_v36  ;;  %1901 = vmatprep.subr.bf16.mxu0 %v1900_v37  ;;  %v107_v36 = vld [vmem:[#allocation2 + $0x180] sm:$0xff]  ;;  %v1918_v37 = vpack.c.bf16 %v351_v28, %v347_v27  ;;  %v78_v24 = vld [vmem:[#allocation2 + $0x98] sm:$0xff]  ;;  %v77_v25 = vld [vmem:[#allocation2 + $0x90] sm:$0xff] }
  0x93   :  { %895 = vmatmul.mubr.f32.gmra.mrb[16].mxu0 %v91_v43  ;;  %2029 = vmatprep.subr.bf16.mxu1 %v2028_v40  ;;  %v2046_v40 = vpack.c.bf16 %v353_v32, %v349_v31  ;;  %v81_v27 = vld [vmem:[#allocation2 + $0xb0] sm:$0xff]  ;;  %v86_v28 = vld [vmem:[#allocation2 + $0xd8] sm:$0xff] }
  0x94   :  { %1217 = vmatmul.mubr.f32.gmra.mrb[16].mxu1 %v91_v43  ;;  %1903 = vmatpush1.bf16.msra.mxu0 %v1902_v44  ;;  %v112_v43 = vld [vmem:[#allocation2 + $0x1a8] sm:$0xff]  ;;  %v1920_v44 = vpack.c.bf16 %v360_v35, %v356_v34  ;;  %v89_v31 = vld [vmem:[#allocation2 + $0xf0] sm:$0xff]  ;;  %v94_v32 = vld [vmem:[#allocation2 + $0x118] sm:$0xff] }
  0x95   :  { %2031 = vmatpush1.bf16.msra.mxu1 %v2030_v47  ;;  %900 = vmatprep.mubr.f32.mxu0 %v96_v50  ;;  %v2048_v47 = vpack.c.bf16 %v362_v39, %v358_v38  ;;  %v98_v34 = vld [vmem:[#allocation2 + $0x138] sm:$0xff]  ;;  %v97_v35 = vld [vmem:[#allocation2 + $0x130] sm:$0xff] }
  0x96   :  { %1222 = vmatprep.mubr.f32.mxu1 %v96_v50  ;;  %1905 = vmatprep.subr.bf16.mxu0 %v1904_v51  ;;  %v111_v50 = vld [vmem:[#allocation2 + $0x1a0] sm:$0xff]  ;;  %v1922_v51 = vpack.c.bf16 %v359_v42, %v355_v41  ;;  %v106_v38 = vld [vmem:[#allocation2 + $0x178] sm:$0xff]  ;;  %v105_v39 = vld [vmem:[#allocation2 + $0x170] sm:$0xff] }
  0x97   :  { %901 = vmatmul.mubr.f32.gmra.mrb[18].mxu0 %v95_v57  ;;  %2033 = vmatprep.subr.bf16.mxu1 %v2032_v54  ;;  %v2050_v54 = vpack.c.bf16 %v361_v46, %v357_v45  ;;  %v109_v41 = vld [vmem:[#allocation2 + $0x190] sm:$0xff]  ;;  %v114_v42 = vld [vmem:[#allocation2 + $0x1b8] sm:$0xff] }
  0x98   :  { %1223 = vmatmul.mubr.f32.gmra.mrb[18].mxu1 %v95_v57  ;;  %1907 = vmatpush1.bf16.msra.mxu0 %v1906_v58  ;;  %v116_v57 = vld [vmem:[#allocation2 + $0x1c8] sm:$0xff]  ;;  %v1924_v58 = vpack.c.bf16 %v368_v49, %v364_v48  ;;  %v117_v45 = vld [vmem:[#allocation2 + $0x1d0] sm:$0xff]  ;;  %v122_v46 = vld [vmem:[#allocation2 + $0x1f8] sm:$0xff]  ;;  %v53_v48 = vlaneseq }
  0x99   :  { %2035 = vmatpush1.bf16.msra.mxu1 %v2034_v61  ;;  %906 = vmatprep.mubr.f32.mxu0 %v100_v1  ;;  %v2052_v61 = vpack.c.bf16 %v370_v53, %v366_v52 }
  0x9a   :  { %1228 = vmatprep.mubr.f32.mxu1 %v100_v1  ;;  %1909 = vmatprep.subr.bf16.mxu0 %v1908_v2  ;;  %v115_v1 = vld [vmem:[#allocation2 + $0x1c0] sm:$0xff]  ;;  %v1926_v2 = vpack.c.bf16 %v367_v56, %v363_v55  ;;  %vm2515_vm1 = vcmp.lt.s32.totalorder %v53_v48, 512 }
  0x9b   :  { %907 = vmatmul.mubr.f32.gmra.mrb[20].mxu0 %v99_v8  ;;  %2037 = vmatprep.subr.bf16.mxu1 %v2036_v5  ;;  %v2054_v5 = vpack.c.bf16 %v369_v60, %v365_v59  ;;  %57 = vst.msk [vmem:[#allocation7] sm:$0xf] %vm2515_vm1, %v2296_v0  ;;  %58 = vst.msk [vmem:[#allocation8] sm:$0xf] %vm2515_vm1, %v2296_v0 }
  0x9c   :  { %1229 = vmatmul.mubr.f32.gmra.mrb[20].mxu1 %v99_v8  ;;  %1911 = vmatpush1.bf16.msra.mxu0 %v1910_v9  ;;  %v120_v8 = vld [vmem:[#allocation2 + $0x1e8] sm:$0xff]  ;;  %v1928_v9 = vpack.c.bf16 %v376_v63, %v372_v62 }
  0x9d   :  { %2039 = vmatpush1.bf16.msra.mxu1 %v2038_v12  ;;  %912 = vmatprep.mubr.f32.mxu0 %v104_v15  ;;  %v2056_v12 = vpack.c.bf16 %v378_v4, %v374_v3 }
  0x9e   :  { %1234 = vmatprep.mubr.f32.mxu1 %v104_v15  ;;  %1913 = vmatprep.subr.bf16.mxu0 %v1912_v16  ;;  %v2058_v15 = vpack.c.bf16 %v377_v11, %v373_v10  ;;  %v62_v16 = vld [vmem:[#allocation2 + $0x18] sm:$0xff] }
  0x9f   :  { %913 = vmatmul.mubr.f32.gmra.mrb[22].mxu0 %v103_v22  ;;  %2041 = vmatprep.subr.bf16.mxu1 %v2040_v19  ;;  %v65_v19 = vld [vmem:[#allocation2 + $0x30] sm:$0xff] }
  0xa0   :  { %1235 = vmatmul.mubr.f32.gmra.mrb[22].mxu1 %v103_v22  ;;  %1915 = vmatpush1.bf16.msra.mxu0 %v1914_v23  ;;  %v74_v22 = vld [vmem:[#allocation2 + $0x78] sm:$0xff]  ;;  %v73_v23 = vld [vmem:[#allocation2 + $0x70] sm:$0xff] }
  0xa1   :  { %2043 = vmatpush1.bf16.msra.mxu1 %v2042_v26  ;;  %918 = vmatprep.mubr.f32.mxu0 %v108_v29  ;;  %v82_v26 = vld [vmem:[#allocation2 + $0xb8] sm:$0xff] }
  0xa2   :  { %1240 = vmatprep.mubr.f32.mxu1 %v108_v29  ;;  %1917 = vmatprep.subr.bf16.mxu0 %v1916_v30  ;;  %v85_v29 = vld [vmem:[#allocation2 + $0xd0] sm:$0xff]  ;;  %v90_v30 = vld [vmem:[#allocation2 + $0xf8] sm:$0xff] }
  0xa3   :  { %919 = vmatmul.mubr.f32.gmra.mrb[24].mxu0 %v107_v36  ;;  %2045 = vmatprep.subr.bf16.mxu1 %v2044_v33  ;;  %v93_v33 = vld [vmem:[#allocation2 + $0x110] sm:$0xff] }
  0xa4   :  { %1241 = vmatmul.mubr.f32.gmra.mrb[24].mxu1 %v107_v36  ;;  %1919 = vmatpush1.bf16.msra.mxu0 %v1918_v37  ;;  %v102_v36 = vld [vmem:[#allocation2 + $0x158] sm:$0xff]  ;;  %v101_v37 = vld [vmem:[#allocation2 + $0x150] sm:$0xff] }
  0xa5   :  { %2047 = vmatpush1.bf16.msra.mxu1 %v2046_v40  ;;  %924 = vmatprep.mubr.f32.mxu0 %v112_v43  ;;  %v110_v40 = vld [vmem:[#allocation2 + $0x198] sm:$0xff] }
  0xa6   :  { %1246 = vmatprep.mubr.f32.mxu1 %v112_v43  ;;  %1921 = vmatprep.subr.bf16.mxu0 %v1920_v44  ;;  %v113_v43 = vld [vmem:[#allocation2 + $0x1b0] sm:$0xff]  ;;  %v118_v44 = vld [vmem:[#allocation2 + $0x1d8] sm:$0xff] }
  0xa7   :  { %925 = vmatmul.mubr.f32.gmra.mrb[26].mxu0 %v111_v50  ;;  %2049 = vmatprep.subr.bf16.mxu1 %v2048_v47  ;;  %v121_v47 = vld [vmem:[#allocation2 + $0x1f0] sm:$0xff] }
  0xa8   :  { %1247 = vmatmul.mubr.f32.gmra.mrb[26].mxu1 %v111_v50  ;;  %1923 = vmatpush1.bf16.msra.mxu0 %v1922_v51 }
  0xa9   :  { %2051 = vmatpush1.bf16.msra.mxu1 %v2050_v54  ;;  %930 = vmatprep.mubr.f32.mxu0 %v116_v57 }
  0xaa   :  { %1252 = vmatprep.mubr.f32.mxu1 %v116_v57  ;;  %1925 = vmatprep.subr.bf16.mxu0 %v1924_v58 }
  0xab   :  { %931 = vmatmul.mubr.f32.gmra.mrb[28].mxu0 %v115_v1  ;;  %2053 = vmatprep.subr.bf16.mxu1 %v2052_v61 }
  0xac   :  { %1253 = vmatmul.mubr.f32.gmra.mrb[28].mxu1 %v115_v1  ;;  %1927 = vmatpush1.bf16.msra.mxu0 %v1926_v2 }
  0xad   :  { %2055 = vmatpush1.bf16.msra.mxu1 %v2054_v5  ;;  %936 = vmatprep.mubr.f32.mxu0 %v120_v8 }
  0xae   :  { %1258 = vmatprep.mubr.f32.mxu1 %v120_v8  ;;  %1929 = vmatprep.subr.bf16.mxu0 %v1928_v9 }
  0xaf   :  { %937 = vmatmul.mubr.f32.gmra.mrb[30].mxu0 %v119_v13  ;;  %2057 = vmatprep.subr.bf16.mxu1 %v2056_v12 }
  0xb0   :  { %1259 = vmatmul.mubr.f32.gmra.mrb[30].mxu1 %v119_v13  ;;  %1931 = vmatpush1.bf16.msra.mxu0 %v1930_v14 }
  0xb1   :  { %2059 = vmatpush1.bf16.msra.mxu1 %v2058_v15  ;;  %1007 = vmatprep.mubr.f32.mxu0 %v62_v16 }
  0xb2   :  { %1329 = vmatprep.mubr.f32.mxu1 %v62_v16 }
  0xb3   :  { %1008 = vmatmul.mubr.f32.vlgmr.msra.gmra.mrb[0].mxu0 %v61_v17 }
  0xb4   :  { %1330 = vmatmul.mubr.f32.vlgmr.msra.gmra.mrb[0].mxu1 %v61_v17  ;;  %1013 = vmatprep.mubr.f32.mxu0 %v66_v18 }
  0xb5   :  { %1335 = vmatprep.mubr.f32.mxu1 %v66_v18 }
  0xb7   :  { %1014 = vmatmul.mubr.f32.gmra.mrb[2].mxu0 %v65_v19 }
  0xb8   :  { %1336 = vmatmul.mubr.f32.gmra.mrb[2].mxu1 %v65_v19  ;;  %1019 = vmatprep.mubr.f32.mxu0 %v70_v20 }
  0xb9   :  { %1341 = vmatprep.mubr.f32.mxu1 %v70_v20 }
  0xbb   :  { %1020 = vmatmul.mubr.f32.gmra.mrb[4].mxu0 %v69_v21 }
  0xbc   :  { %1342 = vmatmul.mubr.f32.gmra.mrb[4].mxu1 %v69_v21  ;;  %1025 = vmatprep.mubr.f32.mxu0 %v74_v22 }
  0xbd   :  { %1347 = vmatprep.mubr.f32.mxu1 %v74_v22 }
  0xbf   :  { %1026 = vmatmul.mubr.f32.gmra.mrb[6].mxu0 %v73_v23 }
  0xc0   :  { %1348 = vmatmul.mubr.f32.gmra.mrb[6].mxu1 %v73_v23  ;;  %1031 = vmatprep.mubr.f32.mxu0 %v78_v24 }
  0xc1   :  { %1353 = vmatprep.mubr.f32.mxu1 %v78_v24 }
  0xc3   :  { %1032 = vmatmul.mubr.f32.gmra.mrb[8].mxu0 %v77_v25 }
  0xc4   :  { %1354 = vmatmul.mubr.f32.gmra.mrb[8].mxu1 %v77_v25  ;;  %1037 = vmatprep.mubr.f32.mxu0 %v82_v26 }
  0xc5   :  { %1359 = vmatprep.mubr.f32.mxu1 %v82_v26 }
  0xc7   :  { %1038 = vmatmul.mubr.f32.gmra.mrb[10].mxu0 %v81_v27 }
  0xc8   :  { %1360 = vmatmul.mubr.f32.gmra.mrb[10].mxu1 %v81_v27  ;;  %1043 = vmatprep.mubr.f32.mxu0 %v86_v28 }
  0xc9   :  { %1365 = vmatprep.mubr.f32.mxu1 %v86_v28 }
  0xcb   :  { %1044 = vmatmul.mubr.f32.gmra.mrb[12].mxu0 %v85_v29 }
  0xcc   :  { %1366 = vmatmul.mubr.f32.gmra.mrb[12].mxu1 %v85_v29  ;;  %1049 = vmatprep.mubr.f32.mxu0 %v90_v30 }
  0xcd   :  { %1371 = vmatprep.mubr.f32.mxu1 %v90_v30 }
  0xcf   :  { %1050 = vmatmul.mubr.f32.gmra.mrb[14].mxu0 %v89_v31 }
  0xd0   :  { %1372 = vmatmul.mubr.f32.gmra.mrb[14].mxu1 %v89_v31  ;;  %1055 = vmatprep.mubr.f32.mxu0 %v94_v32 }
  0xd1   :  { %1377 = vmatprep.mubr.f32.mxu1 %v94_v32 }
  0xd3   :  { %1056 = vmatmul.mubr.f32.gmra.mrb[16].mxu0 %v93_v33 }
  0xd4   :  { %1378 = vmatmul.mubr.f32.gmra.mrb[16].mxu1 %v93_v33  ;;  %1061 = vmatprep.mubr.f32.mxu0 %v98_v34 }
  0xd5   :  { %1383 = vmatprep.mubr.f32.mxu1 %v98_v34 }
  0xd7   :  { %1062 = vmatmul.mubr.f32.gmra.mrb[18].mxu0 %v97_v35 }
  0xd8   :  { %1384 = vmatmul.mubr.f32.gmra.mrb[18].mxu1 %v97_v35  ;;  %1067 = vmatprep.mubr.f32.mxu0 %v102_v36 }
  0xd9   :  { %1389 = vmatprep.mubr.f32.mxu1 %v102_v36 }
  0xdb   :  { %1068 = vmatmul.mubr.f32.gmra.mrb[20].mxu0 %v101_v37 }
  0xdc   :  { %1390 = vmatmul.mubr.f32.gmra.mrb[20].mxu1 %v101_v37  ;;  %1073 = vmatprep.mubr.f32.mxu0 %v106_v38 }
  0xdd   :  { %1395 = vmatprep.mubr.f32.mxu1 %v106_v38 }
  0xdf   :  { %1074 = vmatmul.mubr.f32.gmra.mrb[22].mxu0 %v105_v39 }
  0xe0   :  { %1396 = vmatmul.mubr.f32.gmra.mrb[22].mxu1 %v105_v39  ;;  %1079 = vmatprep.mubr.f32.mxu0 %v110_v40 }
  0xe1   :  { %1401 = vmatprep.mubr.f32.mxu1 %v110_v40 }
  0xe3   :  { %1080 = vmatmul.mubr.f32.gmra.mrb[24].mxu0 %v109_v41 }
  0xe4   :  { %1402 = vmatmul.mubr.f32.gmra.mrb[24].mxu1 %v109_v41  ;;  %1085 = vmatprep.mubr.f32.mxu0 %v114_v42 }
  0xe5   :  { %1407 = vmatprep.mubr.f32.mxu1 %v114_v42 }
  0xe7   :  { %1086 = vmatmul.mubr.f32.gmra.mrb[26].mxu0 %v113_v43 }
  0xe8   :  { %1408 = vmatmul.mubr.f32.gmra.mrb[26].mxu1 %v113_v43  ;;  %1091 = vmatprep.mubr.f32.mxu0 %v118_v44 }
  0xe9   :  { %1413 = vmatprep.mubr.f32.mxu1 %v118_v44 }
  0xeb   :  { %1092 = vmatmul.mubr.f32.gmra.mrb[28].mxu0 %v117_v45 }
  0xec   :  { %1414 = vmatmul.mubr.f32.gmra.mrb[28].mxu1 %v117_v45  ;;  %1097 = vmatprep.mubr.f32.mxu0 %v122_v46 }
  0xed   :  { %1419 = vmatprep.mubr.f32.mxu1 %v122_v46 }
  0xef   :  { %1098 = vmatmul.mubr.f32.gmra.mrb[30].mxu0 %v121_v47 }
  0xf0   :  { %1420 = vmatmul.mubr.f32.gmra.mrb[30].mxu1 %v121_v47 }
 0x186   :  { %v1009_v50 = vpop.f32.mrb[0].mxu0 }
 0x187   :  { %v1331_v51 = vpop.f32.mrb[0].mxu1  ;;  %v1011_v52 = vpop.f32.mrb[1].mxu0  ;;  %v1547_v54 = vmul.f32 %v1009_v50, %v1009_v50 }
 0x188   :  { %v1333_v53 = vpop.f32.mrb[1].mxu1  ;;  %v1549_v56 = vmul.f32 %v1331_v51, %v1331_v51  ;;  %v1548_v57 = vmul.f32 %v1011_v52, %v1011_v52 }
 0x189   :  { %v1550_v4 = vmul.f32 %v1333_v53, %v1333_v53 }
 0x18a   :  { %v1015_v55 = vpop.f32.mrb[2].mxu0 }
 0x18b   :  { %v1427_v58 = vadd.f32 %v1015_v55, %v1009_v50  ;;  %v1551_v59 = vmul.f32 %v1015_v55, %v1015_v55  ;;  %v1337_v60 = vpop.f32.mrb[2].mxu1  ;;  %v1017_v61 = vpop.f32.mrb[3].mxu0 }
 0x18c   :  { %v1469_v62 = vadd.f32 %v1337_v60, %v1331_v51  ;;  %v1553_v63 = vmul.f32 %v1337_v60, %v1337_v60  ;;  %v1448_v1 = vadd.f32 %v1017_v61, %v1011_v52  ;;  %v1552_v2 = vmul.f32 %v1017_v61, %v1017_v61  ;;  %v1339_v3 = vpop.f32.mrb[3].mxu1 }
 0x18d   :  { %v1611_v5 = vadd.f32 %v1551_v59, %v1547_v54  ;;  %v1490_v0 = vadd.f32 %v1339_v3, %v1333_v53  ;;  %v1554_v6 = vmul.f32 %v1339_v3, %v1339_v3 }
 0x18e   :  { %v1653_v7 = vadd.f32 %v1553_v63, %v1549_v56  ;;  %v1632_v8 = vadd.f32 %v1552_v2, %v1548_v57  ;;  %v1021_v9 = vpop.f32.mrb[4].mxu0 }
 0x18f   :  { %v1674_v10 = vadd.f32 %v1554_v6, %v1550_v4  ;;  %v1428_v11 = vadd.f32 %v1427_v58, %v1021_v9  ;;  %v1555_v12 = vmul.f32 %v1021_v9, %v1021_v9  ;;  %v1343_v13 = vpop.f32.mrb[4].mxu1  ;;  %v1023_v14 = vpop.f32.mrb[5].mxu0 }
 0x190   :  { %v1470_v15 = vadd.f32 %v1469_v62, %v1343_v13  ;;  %v1557_v16 = vmul.f32 %v1343_v13, %v1343_v13  ;;  %v1449_v17 = vadd.f32 %v1448_v1, %v1023_v14  ;;  %v1556_v18 = vmul.f32 %v1023_v14, %v1023_v14  ;;  %v1345_v19 = vpop.f32.mrb[5].mxu1 }
 0x191   :  { %v1612_v20 = vadd.f32 %v1611_v5, %v1555_v12  ;;  %v1491_v21 = vadd.f32 %v1490_v0, %v1345_v19  ;;  %v1558_v22 = vmul.f32 %v1345_v19, %v1345_v19 }
 0x192   :  { %v1654_v23 = vadd.f32 %v1653_v7, %v1557_v16  ;;  %v1633_v24 = vadd.f32 %v1632_v8, %v1556_v18  ;;  %v1027_v25 = vpop.f32.mrb[6].mxu0 }
 0x193   :  { %v1675_v26 = vadd.f32 %v1674_v10, %v1558_v22  ;;  %v1429_v27 = vadd.f32 %v1428_v11, %v1027_v25  ;;  %v1559_v28 = vmul.f32 %v1027_v25, %v1027_v25  ;;  %v1349_v29 = vpop.f32.mrb[6].mxu1  ;;  %v1029_v30 = vpop.f32.mrb[7].mxu0 }
 0x194   :  { %v1471_v31 = vadd.f32 %v1470_v15, %v1349_v29  ;;  %v1561_v32 = vmul.f32 %v1349_v29, %v1349_v29  ;;  %v1450_v33 = vadd.f32 %v1449_v17, %v1029_v30  ;;  %v1560_v34 = vmul.f32 %v1029_v30, %v1029_v30  ;;  %v1351_v35 = vpop.f32.mrb[7].mxu1 }
 0x195   :  { %v1613_v36 = vadd.f32 %v1612_v20, %v1559_v28  ;;  %v1492_v37 = vadd.f32 %v1491_v21, %v1351_v35  ;;  %v1562_v38 = vmul.f32 %v1351_v35, %v1351_v35 }
 0x196   :  { %v1655_v39 = vadd.f32 %v1654_v23, %v1561_v32  ;;  %v1634_v40 = vadd.f32 %v1633_v24, %v1560_v34  ;;  %v1033_v41 = vpop.f32.mrb[8].mxu0 }
 0x197   :  { %v1676_v42 = vadd.f32 %v1675_v26, %v1562_v38  ;;  %v1430_v43 = vadd.f32 %v1429_v27, %v1033_v41  ;;  %v1563_v44 = vmul.f32 %v1033_v41, %v1033_v41  ;;  %v1355_v45 = vpop.f32.mrb[8].mxu1  ;;  %v1035_v46 = vpop.f32.mrb[9].mxu0 }
 0x198   :  { %v1472_v47 = vadd.f32 %v1471_v31, %v1355_v45  ;;  %v1565_v50 = vmul.f32 %v1355_v45, %v1355_v45  ;;  %v1451_v51 = vadd.f32 %v1450_v33, %v1035_v46  ;;  %v1564_v52 = vmul.f32 %v1035_v46, %v1035_v46  ;;  %v1357_v53 = vpop.f32.mrb[9].mxu1 }
 0x199   :  { %v1614_v54 = vadd.f32 %v1613_v36, %v1563_v44  ;;  %v1493_v55 = vadd.f32 %v1492_v37, %v1357_v53  ;;  %v1566_v56 = vmul.f32 %v1357_v53, %v1357_v53 }
 0x19a   :  { %v1656_v57 = vadd.f32 %v1655_v39, %v1565_v50  ;;  %v1635_v58 = vadd.f32 %v1634_v40, %v1564_v52  ;;  %v1039_v59 = vpop.f32.mrb[10].mxu0 }
 0x19b   :  { %v1677_v60 = vadd.f32 %v1676_v42, %v1566_v56  ;;  %v1431_v61 = vadd.f32 %v1430_v43, %v1039_v59  ;;  %v1567_v62 = vmul.f32 %v1039_v59, %v1039_v59  ;;  %v1361_v63 = vpop.f32.mrb[10].mxu1  ;;  %v1041_v1 = vpop.f32.mrb[11].mxu0 }
 0x19c   :  { %v1473_v2 = vadd.f32 %v1472_v47, %v1361_v63  ;;  %v1569_v3 = vmul.f32 %v1361_v63, %v1361_v63  ;;  %v1452_v4 = vadd.f32 %v1451_v51, %v1041_v1  ;;  %v1568_v5 = vmul.f32 %v1041_v1, %v1041_v1  ;;  %v1363_v0 = vpop.f32.mrb[11].mxu1 }
 0x19d   :  { %v1615_v6 = vadd.f32 %v1614_v54, %v1567_v62  ;;  %v1494_v7 = vadd.f32 %v1493_v55, %v1363_v0  ;;  %v1570_v8 = vmul.f32 %v1363_v0, %v1363_v0 }
 0x19e   :  { %v1657_v9 = vadd.f32 %v1656_v57, %v1569_v3  ;;  %v1636_v10 = vadd.f32 %v1635_v58, %v1568_v5  ;;  %v1045_v11 = vpop.f32.mrb[12].mxu0 }
 0x19f   :  { %v1678_v12 = vadd.f32 %v1677_v60, %v1570_v8  ;;  %v1432_v13 = vadd.f32 %v1431_v61, %v1045_v11  ;;  %v1571_v14 = vmul.f32 %v1045_v11, %v1045_v11  ;;  %v1367_v15 = vpop.f32.mrb[12].mxu1  ;;  %v1047_v16 = vpop.f32.mrb[13].mxu0 }
 0x1a0   :  { %v1474_v17 = vadd.f32 %v1473_v2, %v1367_v15  ;;  %v1573_v18 = vmul.f32 %v1367_v15, %v1367_v15  ;;  %v1453_v19 = vadd.f32 %v1452_v4, %v1047_v16  ;;  %v1572_v20 = vmul.f32 %v1047_v16, %v1047_v16  ;;  %v1369_v21 = vpop.f32.mrb[13].mxu1 }
 0x1a1   :  { %v1616_v22 = vadd.f32 %v1615_v6, %v1571_v14  ;;  %v1495_v23 = vadd.f32 %v1494_v7, %v1369_v21  ;;  %v1574_v24 = vmul.f32 %v1369_v21, %v1369_v21 }
 0x1a2   :  { %v1658_v25 = vadd.f32 %v1657_v9, %v1573_v18  ;;  %v1637_v26 = vadd.f32 %v1636_v10, %v1572_v20  ;;  %v1051_v27 = vpop.f32.mrb[14].mxu0 }
 0x1a3   :  { %v1679_v28 = vadd.f32 %v1678_v12, %v1574_v24  ;;  %v1433_v29 = vadd.f32 %v1432_v13, %v1051_v27  ;;  %v1575_v30 = vmul.f32 %v1051_v27, %v1051_v27  ;;  %v1373_v31 = vpop.f32.mrb[14].mxu1  ;;  %v1053_v32 = vpop.f32.mrb[15].mxu0 }
 0x1a4   :  { %v1475_v33 = vadd.f32 %v1474_v17, %v1373_v31  ;;  %v1577_v34 = vmul.f32 %v1373_v31, %v1373_v31  ;;  %v1454_v35 = vadd.f32 %v1453_v19, %v1053_v32  ;;  %v1576_v36 = vmul.f32 %v1053_v32, %v1053_v32  ;;  %v1375_v37 = vpop.f32.mrb[15].mxu1 }
 0x1a5   :  { %v1617_v38 = vadd.f32 %v1616_v22, %v1575_v30  ;;  %v1496_v39 = vadd.f32 %v1495_v23, %v1375_v37  ;;  %v1578_v40 = vmul.f32 %v1375_v37, %v1375_v37 }
 0x1a6   :  { %v1659_v41 = vadd.f32 %v1658_v25, %v1577_v34  ;;  %v1638_v42 = vadd.f32 %v1637_v26, %v1576_v36  ;;  %v1057_v43 = vpop.f32.mrb[16].mxu0 }
 0x1a7   :  { %v1680_v44 = vadd.f32 %v1679_v28, %v1578_v40  ;;  %v1434_v45 = vadd.f32 %v1433_v29, %v1057_v43  ;;  %v1579_v46 = vmul.f32 %v1057_v43, %v1057_v43  ;;  %v1379_v47 = vpop.f32.mrb[16].mxu1  ;;  %v1059_v50 = vpop.f32.mrb[17].mxu0 }
 0x1a8   :  { %v1476_v51 = vadd.f32 %v1475_v33, %v1379_v47  ;;  %v1581_v52 = vmul.f32 %v1379_v47, %v1379_v47  ;;  %v1455_v53 = vadd.f32 %v1454_v35, %v1059_v50  ;;  %v1580_v54 = vmul.f32 %v1059_v50, %v1059_v50  ;;  %v1381_v55 = vpop.f32.mrb[17].mxu1 }
 0x1a9   :  { %v1618_v56 = vadd.f32 %v1617_v38, %v1579_v46  ;;  %v1497_v57 = vadd.f32 %v1496_v39, %v1381_v55  ;;  %v1582_v58 = vmul.f32 %v1381_v55, %v1381_v55 }
 0x1aa   :  { %v1660_v59 = vadd.f32 %v1659_v41, %v1581_v52  ;;  %v1639_v60 = vadd.f32 %v1638_v42, %v1580_v54  ;;  %v1063_v61 = vpop.f32.mrb[18].mxu0 }
 0x1ab   :  { %v1681_v62 = vadd.f32 %v1680_v44, %v1582_v58  ;;  %v1435_v63 = vadd.f32 %v1434_v45, %v1063_v61  ;;  %v1583_v1 = vmul.f32 %v1063_v61, %v1063_v61  ;;  %v1385_v2 = vpop.f32.mrb[18].mxu1  ;;  %v1065_v3 = vpop.f32.mrb[19].mxu0 }
 0x1ac   :  { %v1477_v4 = vadd.f32 %v1476_v51, %v1385_v2  ;;  %v1585_v5 = vmul.f32 %v1385_v2, %v1385_v2  ;;  %v1456_v0 = vadd.f32 %v1455_v53, %v1065_v3  ;;  %v1584_v6 = vmul.f32 %v1065_v3, %v1065_v3  ;;  %v1387_v7 = vpop.f32.mrb[19].mxu1 }
 0x1ad   :  { %v1619_v8 = vadd.f32 %v1618_v56, %v1583_v1  ;;  %v1498_v9 = vadd.f32 %v1497_v57, %v1387_v7  ;;  %v1586_v10 = vmul.f32 %v1387_v7, %v1387_v7  ;;  %v2297_v1 = vmov 1966171168  }
 0x1ae   :  { %v1661_v11 = vadd.f32 %v1660_v59, %v1585_v5  ;;  %v1640_v12 = vadd.f32 %v1639_v60, %v1584_v6  ;;  %v1069_v13 = vpop.f32.mrb[20].mxu0  ;;  %v1518_v2 = vunpack.c.l.s4 %v2297_v1 }
 0x1af   :  { %v1682_v14 = vadd.f32 %v1681_v62, %v1586_v10  ;;  %v1436_v15 = vadd.f32 %v1435_v63, %v1069_v13  ;;  %v1587_v16 = vmul.f32 %v1069_v13, %v1069_v13  ;;  %v1391_v17 = vpop.f32.mrb[20].mxu1  ;;  %v1071_v18 = vpop.f32.mrb[21].mxu0 }
 0x1b0   :  { %v1478_v19 = vadd.f32 %v1477_v4, %v1391_v17  ;;  %v1589_v20 = vmul.f32 %v1391_v17, %v1391_v17  ;;  %v1457_v21 = vadd.f32 %v1456_v0, %v1071_v18  ;;  %v1588_v22 = vmul.f32 %v1071_v18, %v1071_v18  ;;  %v1393_v23 = vpop.f32.mrb[21].mxu1 }
 0x1b1   :  { %v1620_v24 = vadd.f32 %v1619_v8, %v1587_v16  ;;  %v1499_v25 = vadd.f32 %v1498_v9, %v1393_v23  ;;  %v1590_v26 = vmul.f32 %v1393_v23, %v1393_v23  ;;  %v1519_v18 = vunpack.c.0.s8 %v1518_v2 }
 0x1b2   :  { %v1662_v27 = vadd.f32 %v1661_v11, %v1589_v20  ;;  %v1641_v28 = vadd.f32 %v1640_v12, %v1588_v22  ;;  %v1075_v29 = vpop.f32.mrb[22].mxu0 }
 0x1b3   :  { %v1683_v30 = vadd.f32 %v1682_v14, %v1590_v26  ;;  %v1437_v31 = vadd.f32 %v1436_v15, %v1075_v29  ;;  %v1591_v32 = vmul.f32 %v1075_v29, %v1075_v29  ;;  %v1397_v33 = vpop.f32.mrb[22].mxu1  ;;  %v1077_v34 = vpop.f32.mrb[23].mxu0 }
 0x1b4   :  { %v1479_v35 = vadd.f32 %v1478_v19, %v1397_v33  ;;  %v1593_v36 = vmul.f32 %v1397_v33, %v1397_v33  ;;  %v1458_v37 = vadd.f32 %v1457_v21, %v1077_v34  ;;  %v1592_v38 = vmul.f32 %v1077_v34, %v1077_v34  ;;  %v1399_v39 = vpop.f32.mrb[23].mxu1 }
 0x1b5   :  { %v1621_v40 = vadd.f32 %v1620_v24, %v1591_v32  ;;  %v1500_v41 = vadd.f32 %v1499_v25, %v1399_v39  ;;  %v1594_v42 = vmul.f32 %v1399_v39, %v1399_v39  ;;  %v1521_v24 = vshrl.u32 %v53_v48, 7 }
 0x1b6   :  { %v1663_v43 = vadd.f32 %v1662_v27, %v1593_v36  ;;  %v1642_v44 = vadd.f32 %v1641_v28, %v1592_v38  ;;  %v1081_v45 = vpop.f32.mrb[24].mxu0 }
 0x1b7   :  { %v1684_v46 = vadd.f32 %v1683_v30, %v1594_v42  ;;  %v1438_v47 = vadd.f32 %v1437_v31, %v1081_v45  ;;  %v1595_v50 = vmul.f32 %v1081_v45, %v1081_v45  ;;  %v1403_v51 = vpop.f32.mrb[24].mxu1  ;;  %v1083_v52 = vpop.f32.mrb[25].mxu0 }
 0x1b8   :  { %v1480_v53 = vadd.f32 %v1479_v35, %v1403_v51  ;;  %v1597_v54 = vmul.f32 %v1403_v51, %v1403_v51  ;;  %v1459_v55 = vadd.f32 %v1458_v37, %v1083_v52  ;;  %v1596_v56 = vmul.f32 %v1083_v52, %v1083_v52  ;;  %v1405_v57 = vpop.f32.mrb[25].mxu1 }
 0x1b9   :  { %v1622_v58 = vadd.f32 %v1621_v40, %v1595_v50  ;;  %v1501_v59 = vadd.f32 %v1500_v41, %v1405_v57  ;;  %v1598_v60 = vmul.f32 %v1405_v57, %v1405_v57  ;;  %v2526_v41 = vsub.s32 %v1519_v18, %v1521_v24 }
 0x1ba   :  { %v1664_v61 = vadd.f32 %v1663_v43, %v1597_v54  ;;  %v1643_v62 = vadd.f32 %v1642_v44, %v1596_v56  ;;  %v1087_v63 = vpop.f32.mrb[26].mxu0 }
 0x1bb   :  { %v1685_v3 = vadd.f32 %v1684_v46, %v1598_v60  ;;  %v1439_v4 = vadd.f32 %v1438_v47, %v1087_v63  ;;  %v1599_v5 = vmul.f32 %v1087_v63, %v1087_v63  ;;  %v1409_v0 = vpop.f32.mrb[26].mxu1  ;;  %v1089_v6 = vpop.f32.mrb[27].mxu0 }
 0x1bc   :  { %v1481_v7 = vadd.f32 %v1480_v53, %v1409_v0  ;;  %v1601_v8 = vmul.f32 %v1409_v0, %v1409_v0  ;;  %v1460_v9 = vadd.f32 %v1459_v55, %v1089_v6  ;;  %v1600_v10 = vmul.f32 %v1089_v6, %v1089_v6  ;;  %v1411_v11 = vpop.f32.mrb[27].mxu1 }
 0x1bd   :  { %v1623_v12 = vadd.f32 %v1622_v58, %v1599_v5  ;;  %v1502_v13 = vadd.f32 %v1501_v59, %v1411_v11  ;;  %v1602_v14 = vmul.f32 %v1411_v11, %v1411_v11 }
 0x1be   :  { %v1665_v15 = vadd.f32 %v1664_v61, %v1601_v8  ;;  %v1644_v16 = vadd.f32 %v1643_v62, %v1600_v10  ;;  %v1093_v17 = vpop.f32.mrb[28].mxu0 }
 0x1bf   :  { %v1686_v19 = vadd.f32 %v1685_v3, %v1602_v14  ;;  %v1440_v20 = vadd.f32 %v1439_v4, %v1093_v17  ;;  %v1603_v21 = vmul.f32 %v1093_v17, %v1093_v17  ;;  %v1415_v22 = vpop.f32.mrb[28].mxu1  ;;  %v1095_v23 = vpop.f32.mrb[29].mxu0 }
 0x1c0   :  { %v1482_v25 = vadd.f32 %v1481_v7, %v1415_v22  ;;  %v1605_v26 = vmul.f32 %v1415_v22, %v1415_v22  ;;  %v1461_v27 = vadd.f32 %v1460_v9, %v1095_v23  ;;  %v1604_v28 = vmul.f32 %v1095_v23, %v1095_v23  ;;  %v1417_v29 = vpop.f32.mrb[29].mxu1 }
 0x1c1   :  { %v1624_v30 = vadd.f32 %v1623_v12, %v1603_v21  ;;  %v1503_v31 = vadd.f32 %v1502_v13, %v1417_v29  ;;  %v1606_v32 = vmul.f32 %v1417_v29, %v1417_v29 }
 0x1c2   :  { %v1666_v33 = vadd.f32 %v1665_v15, %v1605_v26  ;;  %v1645_v34 = vadd.f32 %v1644_v16, %v1604_v28  ;;  %v1099_v35 = vpop.f32.mrb[30].mxu0 }
 0x1c3   :  { %v1687_v36 = vadd.f32 %v1686_v19, %v1606_v32  ;;  %v1441_v37 = vadd.f32 %v1440_v20, %v1099_v35  ;;  %v1607_v38 = vmul.f32 %v1099_v35, %v1099_v35  ;;  %v1421_v39 = vpop.f32.mrb[30].mxu1  ;;  %v1101_v40 = vpop.f32.mrb[31].mxu0 }
 0x1c4   :  { %v1483_v42 = vadd.f32 %v1482_v25, %v1421_v39  ;;  %v1609_v48 = vmul.f32 %v1421_v39, %v1421_v39  ;;  %v1462_v43 = vadd.f32 %v1461_v27, %v1101_v40  ;;  %v1608_v44 = vmul.f32 %v1101_v40, %v1101_v40  ;;  %v1423_v45 = vpop.f32.mrb[31].mxu1 }
 0x1c5   :  { %v1442_v46 = vrot.slane %v1441_v37, 4  ;;  %v1625_v47 = vadd.f32 %v1624_v30, %v1607_v38  ;;  %v1504_v50 = vadd.f32 %v1503_v31, %v1423_v45  ;;  %v1610_v51 = vmul.f32 %v1423_v45, %v1423_v45 }
 0x1c6   :  { %v1484_v52 = vrot.slane %v1483_v42, 4  ;;  %v1667_v53 = vadd.f32 %v1666_v33, %v1609_v48  ;;  %v1463_v54 = vrot.slane %v1462_v43, 4  ;;  %v1646_v55 = vadd.f32 %v1645_v34, %v1608_v44 }
 0x1c7   :  { %v1443_v56 = vadd.f32 %v1442_v46, %v1441_v37  ;;  %v1626_v57 = vrot.slane %v1625_v47, 4  ;;  %v1505_v58 = vrot.slane %v1504_v50, 4  ;;  %v1688_v59 = vadd.f32 %v1687_v36, %v1610_v51 }
 0x1c8   :  { %v1485_v60 = vadd.f32 %v1484_v52, %v1483_v42  ;;  %v1668_v61 = vrot.slane %v1667_v53, 4  ;;  %v1464_v62 = vadd.f32 %v1463_v54, %v1462_v43  ;;  %v1647_v63 = vrot.slane %v1646_v55, 4  ;;  %v1546_v52 = vld [vmem:[#allocation8] sm:$0xf] }
 0x1c9   :  { %v1444_v1 = vrot.slane %v1443_v56, 2  ;;  %v1627_v2 = vadd.f32 %v1626_v57, %v1625_v47  ;;  %v1506_v3 = vadd.f32 %v1505_v58, %v1504_v50  ;;  %v1689_v4 = vrot.slane %v1688_v59, 4  ;;  %v1426_v47 = vld [vmem:[#allocation7] sm:$0xf] }
 0x1ca   :  { %v1486_v5 = vrot.slane %v1485_v60, 2  ;;  %v1669_v0 = vadd.f32 %v1668_v61, %v1667_v53  ;;  %v1465_v6 = vrot.slane %v1464_v62, 2  ;;  %v1648_v7 = vadd.f32 %v1647_v63, %v1646_v55 }
 0x1cb   :  { %v1445_v8 = vadd.f32 %v1444_v1, %v1443_v56  ;;  %v1628_v9 = vrot.slane %v1627_v2, 2  ;;  %v1507_v10 = vrot.slane %v1506_v3, 2  ;;  %v1690_v11 = vadd.f32 %v1689_v4, %v1688_v59 }
 0x1cc   :  { %v1487_v12 = vadd.f32 %v1486_v5, %v1485_v60  ;;  %v1670_v13 = vrot.slane %v1669_v0, 2  ;;  %v1466_v14 = vadd.f32 %v1465_v6, %v1464_v62  ;;  %v1649_v15 = vrot.slane %v1648_v7, 2 }
 0x1cd   :  { %v1446_v16 = vrot.slane %v1445_v8, 1  ;;  %v1629_v17 = vadd.f32 %v1628_v9, %v1627_v2  ;;  %v1508_v18 = vadd.f32 %v1507_v10, %v1506_v3  ;;  %v1691_v19 = vrot.slane %v1690_v11, 2 }
 0x1ce   :  { %v1488_v20 = vrot.slane %v1487_v12, 1  ;;  %v1671_v21 = vadd.f32 %v1670_v13, %v1669_v0  ;;  %v1467_v22 = vrot.slane %v1466_v14, 1  ;;  %v1650_v23 = vadd.f32 %v1649_v15, %v1648_v7 }
 0x1cf   :  { %v1447_v24 = vadd.f32 %v1446_v16, %v1445_v8  ;;  %v1630_v25 = vrot.slane %v1629_v17, 1  ;;  %v1509_v26 = vrot.slane %v1508_v18, 1  ;;  %v1692_v27 = vadd.f32 %v1691_v19, %v1690_v11 }
 0x1d0   :  { %v1489_v28 = vadd.f32 %v1488_v20, %v1487_v12  ;;  %v1672_v29 = vrot.slane %v1671_v21, 1  ;;  %v1468_v30 = vadd.f32 %v1467_v22, %v1466_v14  ;;  %v1651_v31 = vrot.slane %v1650_v23, 1 }
 0x1d1   :  { %v1631_v32 = vadd.f32 %v1630_v25, %v1629_v17  ;;  %v1510_v33 = vadd.f32 %v1509_v26, %v1508_v18  ;;  %v1693_v34 = vrot.slane %v1692_v27, 1 }
 0x1d2   :  { %v1673_v35 = vadd.f32 %v1672_v29, %v1671_v21  ;;  %v1515_v36 = vcombine.low %v1447_v24, %v1468_v30  ;;  %v1652_v37 = vadd.f32 %v1651_v31, %v1650_v23 }
 0x1d3   :  { %v1516_v38 = vcombine.low %v1489_v28, %v1510_v33  ;;  %v1694_v39 = vadd.f32 %v1693_v34, %v1692_v27 }
 0x1d4   :  { %v1699_v40 = vcombine.low %v1631_v32, %v1652_v37  ;;  %v1523_v42 = vrot.slane %v1515_v36, %v2526_v41 }
 0x1d5   :  { %v1700_v48 = vcombine.low %v1673_v35, %v1694_v39  ;;  %v1530_v43 = vrot.slane %v1516_v38, %v2526_v41 }
 0x1d6   :  { %v1707_v44 = vrot.slane %v1699_v40, %v2526_v41 }
 0x1d7   :  { %v1531_v45 = vcombine.low %v1523_v42, %v1530_v43  ;;  %v1714_v46 = vrot.slane %v1700_v48, %v2526_v41 }
 0x1d9   :  { %v1538_v50 = vrot.slane %v1531_v45, %v2526_v41  ;;  %v1715_v51 = vcombine.low %v1707_v44, %v1714_v46 }
 0x1db   :  { %v1540_v53 = vadd.f32 %v1538_v50, %v1426_v47  ;;  %v1722_v54 = vrot.slane %v1715_v51, %v2526_v41 }
 0x1dd   :  { %1545 = vst.msk [vmem:[#allocation7] sm:$0xf] %vm2515_vm1, %v1540_v53  ;;  %v1724_v55 = vadd.f32 %v1722_v54, %v1546_v52 }
 0x1de   :  { %2251 = shalt.err (!%p2248_p6)
}
 0x1df   :  { %s2252_s6 = scalar_lea.hbm %s2566_s4, 64 }
 0x1e0   :  { %p2253_p7 = scmp.ne.s32.totalorder %s2566_s4, %s2252_s6  ;;  %p2256_p8 = scmp.lt.u32.totalorder %s2252_s6, %s2566_s4 }
 0x1e2   :  { %p2258_p9 = pnand %p2256_p8, %p2253_p7 }
 0x1e4   :  { %2261 = shalt.err (!%p2258_p9)
}
 0x1e5   :  { %1735 = dma.vmem_to_hbm [thread:$0]  %s1733_s25, 64, %s2566_s4, [#allocation4]   ;;  %1725 = vst.msk [vmem:[#allocation8] sm:$0xf] %vm2515_vm1, %v1724_v55 }
 0x1e6   :  { %s2262_s13 = scalar_lea.vmem %s1743_s27, 64  ;;  %p2267_p11 = scmp.lt.s32.totalorder %s1743_s27, %s1743_s27 }
 0x1e7   :  { %p2263_p10 = scmp.ne.s32.totalorder %s1743_s27, %s2262_s13  ;;  %p2268_p12 = scmp.lt.s32.totalorder %s2262_s13, %s2262_s13 }
 0x1e9   :  { %p2269_p13 = por %p2268_p12, %p2267_p11 }
 0x1eb   :  { %p2270_p0 = pnand %p2269_p13, %p2263_p10 }
 0x1ed   :  { %2273 = shalt.err (!%p2270_p0)
}
 0x1ee   :  { %s2274_s16 = scalar_lea.hbm %s2567_s5, 64 }
 0x1ef   :  { %p2275_p1 = scmp.ne.s32.totalorder %s2567_s5, %s2274_s16  ;;  %p2278_p2 = scmp.lt.u32.totalorder %s2274_s16, %s2567_s5 }
 0x1f1   :  { %p2280_p3 = pnand %p2278_p2, %p2275_p1 }
 0x1f3   :  { %2283 = shalt.err (!%p2280_p3)
}
 0x1f4   :  { %1745 = dma.vmem_to_hbm [thread:$0]  %s1743_s27, 64, %s2567_s5, [#allocation9]  }
 0x1f5   :  { %2288 = dma.done.wait [#allocation4], 64  }
 0x1f6   :  { %2289 = vsyncadd [#allocation4], 4294967232 }
 0x1f7   :  { %2290 = dma.done.wait [#allocation9], 64  }
 0x1f8   :  { %2291 = vsyncadd [#allocation9], 4294967232 }
 0x1f9   :  { %1752 = vsyncpa [#allocation3], 1 }
 0x1fa   :  { %1753 = vsyncpa [#allocation6], 1 }
 0x1fb   :  { %1754 = vsyncpa [#allocation4], 1 }
 0x1fc   :  { %1755 = vsyncpa [#allocation9], 1 }

</bundles_post_ra>
